<compile_context>
chip_gen: v7x
topology: tpu7x:2x2x1
jax: 0.10.0
libtpu: 0.0.40
codegen_flags: <defaults>
</compile_context>

<pallas_src>
import math

import jax
import jax.numpy as jnp
from jax.experimental import pallas as pl
from jax.experimental.pallas import tpu as pltpu

OUT_PAD = 128  # lane-dense padding for the single HBM output store


# ---------------------------------------------------------------------------
# Fused Pallas kernel (whole InteractionBlock forward)
# ---------------------------------------------------------------------------
def _make_fused_kernel(n_cat, n_lin):
    """Build the fused kernel; n_cat/n_lin are the lins_cat / lins depths."""

    def kernel(*refs):
        (x_ref, feat_ref, src_oh_ref, dst_oh_t_ref,
         wl1_ref, bl1_ref, wl2_ref, bl2_ref,
         wf1_ref, wf2_ref,
         wrel_ref, brel_ref, wroot_ref,
         wlin_ref, blin_ref,
         tile_ref) = refs[:16]
        idx = 16
        cat_refs = refs[idx:idx + 2 * n_cat]
        idx += 2 * n_cat
        lin_refs = refs[idx:idx + 2 * n_lin]
        idx += 2 * n_lin
        wfin_ref = refs[idx]
        bfin_ref = refs[idx + 1]
        o_ref = refs[idx + 2]

        def dot(a, b):
            return jnp.dot(a, b, preferred_element_type=jnp.float32)

        def swish(v):
            return v * jax.nn.sigmoid(v)

        x = x_ref[...]                                                 # [N,H]
        x_lin_1 = swish(dot(x, wl1_ref[...]) + bl1_ref[...])           # [N,H]
        x_lin_2 = swish(dot(x, wl2_ref[...]) + bl2_ref[...])           # [N,H]

        # TwoLinear feature embeddings, all three branches at once via
        # block-diagonal W1/W2 on the concatenated [E, F0+F1+F2] input.
        f_all = dot(dot(feat_ref[...], wf1_ref[...]), wf2_ref[...])    # [E,3H]

        # EdgeGraphConv x3, fused:
        #   gather once, tile to 3H lanes via a [H,3H] identity-tile matmul
        #   (avoids in-kernel concat/reshape), multiply by the [E,3H] feature
        #   slab, scatter-add once.
        gathered = dot(src_oh_ref[...], x_lin_1)                       # [E,H]
        gathered3 = dot(gathered, tile_ref[...])                       # [E,3H]
        msg = f_all * gathered3                                        # edge_weight * x_j
        agg = dot(dst_oh_t_ref[...], msg)                              # [N,3H] scatter-add

        # lin_rel (block-diag) + lin_root (hstacked), then lin_i + swish
        conv = dot(agg, wrel_ref[...]) + brel_ref[...] + dot(x_lin_1, wroot_ref[...])
        h = swish(dot(conv, wlin_ref[...]) + blin_ref[...])            # [N,3H] == cat(h0,h1,h2)

        # lins_cat chain (first layer is 3H -> H), unrolled at trace time,
        # h stays resident in vregs/VMEM across layers.
        for li in range(n_cat):
            w = cat_refs[2 * li][...]
            b = cat_refs[2 * li + 1][...]
            h = swish(dot(h, w) + b)

        h = h + x_lin_2

        for li in range(n_lin):
            w = lin_refs[2 * li][...]
            b = lin_refs[2 * li + 1][...]
            h = swish(dot(h, w) + b)

        # Final projection, lane-padded to 128 so the single HBM store is an
        # unmasked full-width vst; wrapper slices back to out_channels.
        o_ref[...] = dot(h, wfin_ref[...]) + bfin_ref[...]

    return kernel


def _full_spec(shape):
    return pl.BlockSpec(shape, lambda i: (0,) * len(shape))


# ---------------------------------------------------------------------------
# Wrapper: build block-diagonal / stacked weights once, single pallas_call
# ---------------------------------------------------------------------------
def interaction_block_forward(params, x, feature0, feature1, pos_emb,
                              src_oh, dst_oh_t, out_channels):
    n, hidden = x.shape
    h3 = 3 * hidden

    blk = jax.scipy.linalg.block_diag

    feat_in = jnp.concatenate([feature0, feature1, pos_emb], axis=1)       # [E, F0+F1+F2]
    wf1 = blk(params["f0_w1"], params["f1_w1"], params["f2_w1"])           # [F_all, 3*mid]
    wf2 = blk(params["f0_w2"], params["f1_w2"], params["f2_w2"])           # [3*mid, 3H]

    wrel = blk(params["conv0_wrel"], params["conv1_wrel"], params["conv2_wrel"])   # [3H,3H]
    brel = jnp.concatenate([params[f"conv{i}_brel"] for i in range(3)]).reshape(1, h3)
    wroot = jnp.concatenate([params[f"conv{i}_wroot"] for i in range(3)], axis=1)  # [H,3H]
    wlin = blk(params["lin0_w"], params["lin1_w"], params["lin2_w"])               # [3H,3H]
    blin = jnp.concatenate([params[f"lin{i}_b"] for i in range(3)]).reshape(1, h3)

    eye = jnp.eye(hidden, dtype=jnp.float32)
    tile = jnp.concatenate([eye, eye, eye], axis=1)                        # [H, 3H]

    wfin_pad = jnp.zeros((hidden, OUT_PAD), jnp.float32).at[:, :out_channels].set(params["final_w"])
    bfin_pad = jnp.zeros((1, OUT_PAD), jnp.float32).at[0, :out_channels].set(params["final_b"])

    inputs = [x, feat_in, src_oh, dst_oh_t,
              params["lin_1_w"], params["lin_1_b"].reshape(1, hidden),
              params["lin_2_w"], params["lin_2_b"].reshape(1, hidden),
              wf1, wf2, wrel, brel, wroot, wlin, blin, tile]
    for w, b in zip(params["cat_w"], params["cat_b"]):
        inputs += [w, b.reshape(1, -1)]
    for w, b in zip(params["lins_w"], params["lins_b"]):
        inputs += [w, b.reshape(1, -1)]
    inputs += [wfin_pad, bfin_pad]

    kernel = _make_fused_kernel(len(params["cat_w"]), len(params["lins_w"]))

    out_pad = pl.pallas_call(
        kernel,
        out_shape=jax.ShapeDtypeStruct((n, OUT_PAD), jnp.float32),
        grid=(1,),
        in_specs=[_full_spec(a.shape) for a in inputs],
        out_specs=_full_spec((n, OUT_PAD)),
        compiler_params=pltpu.CompilerParams(
            dimension_semantics=("arbitrary",)),
    )(*inputs)

    return out_pad[:, :out_channels]


# ---------------------------------------------------------------------------
# Parameter init (deterministic, synthetic; mirrors module __init__ shapes)
# ---------------------------------------------------------------------------
def glorot(key, fan_in, fan_out):
    limit = math.sqrt(6.0 / (fan_in + fan_out))
    return jax.random.uniform(key, (fan_in, fan_out), jnp.float32, -limit, limit)


def small_bias(key, n):
    return 0.01 * jax.random.normal(key, (n,), jnp.float32)


def init_params(key, hidden, out_ch, num_radial, num_spherical, num_layers,
                mid_emb, num_pos_emb):
    ks = iter(jax.random.split(key, 64))
    p = {}
    for name in ("lin_1", "lin_2"):
        p[f"{name}_w"] = glorot(next(ks), hidden, hidden)
        p[f"{name}_b"] = small_bias(next(ks), hidden)
    f0_in = num_radial * num_spherical ** 2
    f1_in = num_radial * num_spherical            # level == 'aminoacid'
    f2_in = num_pos_emb
    for name, fin in (("f0", f0_in), ("f1", f1_in), ("f2", f2_in)):
        p[f"{name}_w1"] = glorot(next(ks), fin, mid_emb)
        p[f"{name}_w2"] = glorot(next(ks), mid_emb, hidden)
    for i in range(3):
        p[f"conv{i}_wrel"] = glorot(next(ks), hidden, hidden)
        p[f"conv{i}_brel"] = small_bias(next(ks), hidden)
        p[f"conv{i}_wroot"] = glorot(next(ks), hidden, hidden)
        p[f"lin{i}_w"] = glorot(next(ks), hidden, hidden)
        p[f"lin{i}_b"] = small_bias(next(ks), hidden)
    p["cat_w"] = [glorot(next(ks), 3 * hidden, hidden)]
    p["cat_b"] = [small_bias(next(ks), hidden)]
    for _ in range(num_layers - 1):
        p["cat_w"].append(glorot(next(ks), hidden, hidden))
        p["cat_b"].append(small_bias(next(ks), hidden))
    p["lins_w"] = [glorot(next(ks), hidden, hidden) for _ in range(num_layers - 1)]
    p["lins_b"] = [small_bias(next(ks), hidden) for _ in range(num_layers - 1)]
    p["final_w"] = glorot(next(ks), hidden, out_ch)
    p["final_b"] = small_bias(next(ks), out_ch)
    return p


# ---------------------------------------------------------------------------
# Pure-JAX reference (real gather + segment_sum) for a correctness check.
# ---------------------------------------------------------------------------
def reference_forward(params, x, feature0, feature1, pos_emb, src, dst, n_nodes):
    swish = lambda v: v * jax.nn.sigmoid(v)
    lin = lambda v, w, b: v @ w + b

    x_lin_1 = swish(lin(x, params["lin_1_w"], params["lin_1_b"]))
    x_lin_2 = swish(lin(x, params["lin_2_w"], params["lin_2_b"]))
    f0 = (feature0 @ params["f0_w1"]) @ params["f0_w2"]
    f1 = (feature1 @ params["f1_w1"]) @ params["f1_w2"]
    f2 = (pos_emb @ params["f2_w1"]) @ params["f2_w2"]

    hs = []
    for i, feat in enumerate((f0, f1, f2)):
        msg = feat * x_lin_1[src]
        agg = jax.ops.segment_sum(msg, dst, num_segments=n_nodes)
        conv = agg @ params[f"conv{i}_wrel"] + params[f"conv{i}_brel"]
        conv = conv + x_lin_1 @ params[f"conv{i}_wroot"]
        hs.append(swish(lin(conv, params[f"lin{i}_w"], params[f"lin{i}_b"])))

    h = jnp.concatenate(hs, axis=1)
    for w, b in zip(params["cat_w"], params["cat_b"]):
        h = swish(lin(h, w, b))
    h = h + x_lin_2
    for w, b in zip(params["lins_w"], params["lins_b"]):
        h = swish(lin(h, w, b))
    return lin(h, params["final_w"], params["final_b"])


# ---------------------------------------------------------------------------
if __name__ == "__main__":
    # Module hyper-params (small, consistent with the PyTorch __init__)
    hidden_channels = 32
    output_channels = 16
    num_radial = 4
    num_spherical = 3
    num_layers = 2
    mid_emb = 16
    num_pos_emb = 16

    N = 8    # nodes
    E = 16   # edges

    key = jax.random.PRNGKey(0)
    k_par, k_x, k_f0, k_f1, k_pe = jax.random.split(key, 5)

    params = init_params(k_par, hidden_channels, output_channels, num_radial,
                         num_spherical, num_layers, mid_emb, num_pos_emb)

    x = jax.random.normal(k_x, (N, hidden_channels), jnp.float32)
    feature0 = jax.random.normal(k_f0, (E, num_radial * num_spherical ** 2), jnp.float32)
    feature1 = jax.random.normal(k_f1, (E, num_radial * num_spherical), jnp.float32)
    pos_emb = jax.random.normal(k_pe, (E, num_pos_emb), jnp.float32)

    # deterministic edge_index [2, E]
    src = (jnp.arange(E, dtype=jnp.int32) * 5 + 2) % N     # x_j source nodes
    dst = (jnp.arange(E, dtype=jnp.int32) * 3 + 1) % N     # aggregation targets
    src_oh = jax.nn.one_hot(src, N, dtype=jnp.float32)      # [E, N]
    dst_oh_t = jax.nn.one_hot(dst, N, dtype=jnp.float32).T  # [N, E]

    out = interaction_block_forward(params, x, feature0, feature1, pos_emb,
                                    src_oh, dst_oh_t, output_channels)
    out = jax.block_until_ready(out)

    ref = reference_forward(params, x, feature0, feature1, pos_emb, src, dst, N)
    assert out.shape == (N, output_channels)
    assert jnp.allclose(out, ref, atol=5e-3, rtol=5e-3), "mismatch vs reference"

    print("KERNEL_OK")
</pallas_src>

<mosaic_0001>
module attributes {stable_mosaic.version = 11 : i64} {
  func.func @kernel(%arg0: i32, %arg1: memref<8x32xf32, #tpu.memory_space<vmem>>, %arg2: memref<16x64xf32, #tpu.memory_space<vmem>>, %arg3: memref<16x8xf32, #tpu.memory_space<vmem>>, %arg4: memref<8x16xf32, #tpu.memory_space<vmem>>, %arg5: memref<32x32xf32, #tpu.memory_space<vmem>>, %arg6: memref<1x32xf32, #tpu.memory_space<vmem>>, %arg7: memref<32x32xf32, #tpu.memory_space<vmem>>, %arg8: memref<1x32xf32, #tpu.memory_space<vmem>>, %arg9: memref<64x48xf32, #tpu.memory_space<vmem>>, %arg10: memref<48x96xf32, #tpu.memory_space<vmem>>, %arg11: memref<96x96xf32, #tpu.memory_space<vmem>>, %arg12: memref<1x96xf32, #tpu.memory_space<vmem>>, %arg13: memref<32x96xf32, #tpu.memory_space<vmem>>, %arg14: memref<96x96xf32, #tpu.memory_space<vmem>>, %arg15: memref<1x96xf32, #tpu.memory_space<vmem>>, %arg16: memref<32x96xf32, #tpu.memory_space<vmem>>, %arg17: memref<96x32xf32, #tpu.memory_space<vmem>>, %arg18: memref<1x32xf32, #tpu.memory_space<vmem>>, %arg19: memref<32x32xf32, #tpu.memory_space<vmem>>, %arg20: memref<1x32xf32, #tpu.memory_space<vmem>>, %arg21: memref<32x32xf32, #tpu.memory_space<vmem>>, %arg22: memref<1x32xf32, #tpu.memory_space<vmem>>, %arg23: memref<32x128xf32, #tpu.memory_space<vmem>>, %arg24: memref<1x128xf32, #tpu.memory_space<vmem>>, %arg25: memref<8x128xf32, #tpu.memory_space<vmem>>) attributes {dimension_semantics = [#tpu.dimension_semantics<arbitrary>], iteration_bounds = array<i64: 1>, scalar_prefetch = 0 : i64, scratch_operands = 0 : i64, tpu.core_type = #tpu.core_type<tc>, window_params = [{pipeline_mode = #tpu.pipeline_mode<synchronous>, transform_indices = @transform_0, window_bounds = array<i64: 8, 32>}, {pipeline_mode = #tpu.pipeline_mode<synchronous>, transform_indices = @transform_1, window_bounds = array<i64: 16, 64>}, {pipeline_mode = #tpu.pipeline_mode<synchronous>, transform_indices = @transform_2, window_bounds = array<i64: 16, 8>}, {pipeline_mode = #tpu.pipeline_mode<synchronous>, transform_indices = @transform_3, window_bounds = array<i64: 8, 16>}, {pipeline_mode = #tpu.pipeline_mode<synchronous>, transform_indices = @transform_4, window_bounds = array<i64: 32, 32>}, {pipeline_mode = #tpu.pipeline_mode<synchronous>, transform_indices = @transform_5, window_bounds = array<i64: 1, 32>}, {pipeline_mode = #tpu.pipeline_mode<synchronous>, transform_indices = @transform_6, window_bounds = array<i64: 32, 32>}, {pipeline_mode = #tpu.pipeline_mode<synchronous>, transform_indices = @transform_7, window_bounds = array<i64: 1, 32>}, {pipeline_mode = #tpu.pipeline_mode<synchronous>, transform_indices = @transform_8, window_bounds = array<i64: 64, 48>}, {pipeline_mode = #tpu.pipeline_mode<synchronous>, transform_indices = @transform_9, window_bounds = array<i64: 48, 96>}, {pipeline_mode = #tpu.pipeline_mode<synchronous>, transform_indices = @transform_10, window_bounds = array<i64: 96, 96>}, {pipeline_mode = #tpu.pipeline_mode<synchronous>, transform_indices = @transform_11, window_bounds = array<i64: 1, 96>}, {pipeline_mode = #tpu.pipeline_mode<synchronous>, transform_indices = @transform_12, window_bounds = array<i64: 32, 96>}, {pipeline_mode = #tpu.pipeline_mode<synchronous>, transform_indices = @transform_13, window_bounds = array<i64: 96, 96>}, {pipeline_mode = #tpu.pipeline_mode<synchronous>, transform_indices = @transform_14, window_bounds = array<i64: 1, 96>}, {pipeline_mode = #tpu.pipeline_mode<synchronous>, transform_indices = @transform_15, window_bounds = array<i64: 32, 96>}, {pipeline_mode = #tpu.pipeline_mode<synchronous>, transform_indices = @transform_16, window_bounds = array<i64: 96, 32>}, {pipeline_mode = #tpu.pipeline_mode<synchronous>, transform_indices = @transform_17, window_bounds = array<i64: 1, 32>}, {pipeline_mode = #tpu.pipeline_mode<synchronous>, transform_indices = @transform_18, window_bounds = array<i64: 32, 32>}, {pipeline_mode = #tpu.pipeline_mode<synchronous>, transform_indices = @transform_19, window_bounds = array<i64: 1, 32>}, {pipeline_mode = #tpu.pipeline_mode<synchronous>, transform_indices = @transform_20, window_bounds = array<i64: 32, 32>}, {pipeline_mode = #tpu.pipeline_mode<synchronous>, transform_indices = @transform_21, window_bounds = array<i64: 1, 32>}, {pipeline_mode = #tpu.pipeline_mode<synchronous>, transform_indices = @transform_22, window_bounds = array<i64: 32, 128>}, {pipeline_mode = #tpu.pipeline_mode<synchronous>, transform_indices = @transform_23, window_bounds = array<i64: 1, 128>}, {pipeline_mode = #tpu.pipeline_mode<synchronous>, transform_indices = @transform_24, window_bounds = array<i64: 8, 128>}]} {
    %c0 = arith.constant 0 : index
    %c0_0 = arith.constant 0 : index
    %0 = vector.load %arg1[%c0, %c0_0] : memref<8x32xf32, #tpu.memory_space<vmem>>, vector<8x32xf32>
    %c0_1 = arith.constant 0 : index
    %c0_2 = arith.constant 0 : index
    %1 = vector.load %arg5[%c0_1, %c0_2] : memref<32x32xf32, #tpu.memory_space<vmem>>, vector<32x32xf32>
    %cst = arith.constant dense<0.000000e+00> : vector<8x32xf32>
    %2 = tpu.matmul %0, %1, %cst {dimension_numbers = #tpu.dot_dimension_numbers<[1], [0], [0], [1], [0, 0, 1, 1], [], []>} : vector<8x32xf32>, vector<32x32xf32>, vector<8x32xf32> -> vector<8x32xf32>
    %c0_3 = arith.constant 0 : index
    %c0_4 = arith.constant 0 : index
    %3 = vector.load %arg6[%c0_3, %c0_4] : memref<1x32xf32, #tpu.memory_space<vmem>>, vector<1x32xf32>
    %4 = vector.broadcast %3 : vector<1x32xf32> to vector<8x32xf32>
    %5 = arith.addf %2, %4 : vector<8x32xf32>
    %6 = arith.negf %5 : vector<8x32xf32>
    %7 = math.exp %6 : vector<8x32xf32>
    %cst_5 = arith.constant 1.000000e+00 : f32
    %8 = vector.broadcast %cst_5 : f32 to vector<8x32xf32>
    %9 = arith.addf %8, %7 : vector<8x32xf32>
    %10 = arith.divf %8, %9 : vector<8x32xf32>
    %11 = arith.mulf %5, %10 : vector<8x32xf32>
    %c0_6 = arith.constant 0 : index
    %c0_7 = arith.constant 0 : index
    %12 = vector.load %arg7[%c0_6, %c0_7] : memref<32x32xf32, #tpu.memory_space<vmem>>, vector<32x32xf32>
    %cst_8 = arith.constant dense<0.000000e+00> : vector<8x32xf32>
    %13 = tpu.matmul %0, %12, %cst_8 {dimension_numbers = #tpu.dot_dimension_numbers<[1], [0], [0], [1], [0, 0, 1, 1], [], []>} : vector<8x32xf32>, vector<32x32xf32>, vector<8x32xf32> -> vector<8x32xf32>
    %c0_9 = arith.constant 0 : index
    %c0_10 = arith.constant 0 : index
    %14 = vector.load %arg8[%c0_9, %c0_10] : memref<1x32xf32, #tpu.memory_space<vmem>>, vector<1x32xf32>
    %15 = vector.broadcast %14 : vector<1x32xf32> to vector<8x32xf32>
    %16 = arith.addf %13, %15 : vector<8x32xf32>
    %17 = arith.negf %16 : vector<8x32xf32>
    %18 = math.exp %17 : vector<8x32xf32>
    %cst_11 = arith.constant 1.000000e+00 : f32
    %19 = vector.broadcast %cst_11 : f32 to vector<8x32xf32>
    %20 = arith.addf %19, %18 : vector<8x32xf32>
    %21 = arith.divf %19, %20 : vector<8x32xf32>
    %22 = arith.mulf %16, %21 : vector<8x32xf32>
    %c0_12 = arith.constant 0 : index
    %c0_13 = arith.constant 0 : index
    %23 = vector.load %arg2[%c0_12, %c0_13] : memref<16x64xf32, #tpu.memory_space<vmem>>, vector<16x64xf32>
    %c0_14 = arith.constant 0 : index
    %c0_15 = arith.constant 0 : index
    %24 = vector.load %arg9[%c0_14, %c0_15] : memref<64x48xf32, #tpu.memory_space<vmem>>, vector<64x48xf32>
    %cst_16 = arith.constant dense<0.000000e+00> : vector<16x48xf32>
    %25 = tpu.matmul %23, %24, %cst_16 {dimension_numbers = #tpu.dot_dimension_numbers<[1], [0], [0], [1], [0, 0, 1, 1], [], []>} : vector<16x64xf32>, vector<64x48xf32>, vector<16x48xf32> -> vector<16x48xf32>
    %c0_17 = arith.constant 0 : index
    %c0_18 = arith.constant 0 : index
    %26 = vector.load %arg10[%c0_17, %c0_18] : memref<48x96xf32, #tpu.memory_space<vmem>>, vector<48x96xf32>
    %cst_19 = arith.constant dense<0.000000e+00> : vector<16x96xf32>
    %27 = tpu.matmul %25, %26, %cst_19 {dimension_numbers = #tpu.dot_dimension_numbers<[1], [0], [0], [1], [0, 0, 1, 1], [], []>} : vector<16x48xf32>, vector<48x96xf32>, vector<16x96xf32> -> vector<16x96xf32>
    %c0_20 = arith.constant 0 : index
    %c0_21 = arith.constant 0 : index
    %28 = vector.load %arg3[%c0_20, %c0_21] : memref<16x8xf32, #tpu.memory_space<vmem>>, vector<16x8xf32>
    %cst_22 = arith.constant dense<0.000000e+00> : vector<16x32xf32>
    %29 = tpu.matmul %28, %11, %cst_22 {dimension_numbers = #tpu.dot_dimension_numbers<[1], [0], [0], [1], [0, 0, 1, 1], [], []>} : vector<16x8xf32>, vector<8x32xf32>, vector<16x32xf32> -> vector<16x32xf32>
    %c0_23 = arith.constant 0 : index
    %c0_24 = arith.constant 0 : index
    %30 = vector.load %arg16[%c0_23, %c0_24] : memref<32x96xf32, #tpu.memory_space<vmem>>, vector<32x96xf32>
    %cst_25 = arith.constant dense<0.000000e+00> : vector<16x96xf32>
    %31 = tpu.matmul %29, %30, %cst_25 {dimension_numbers = #tpu.dot_dimension_numbers<[1], [0], [0], [1], [0, 0, 1, 1], [], []>} : vector<16x32xf32>, vector<32x96xf32>, vector<16x96xf32> -> vector<16x96xf32>
    %32 = arith.mulf %27, %31 : vector<16x96xf32>
    %c0_26 = arith.constant 0 : index
    %c0_27 = arith.constant 0 : index
    %33 = vector.load %arg4[%c0_26, %c0_27] : memref<8x16xf32, #tpu.memory_space<vmem>>, vector<8x16xf32>
    %cst_28 = arith.constant dense<0.000000e+00> : vector<8x96xf32>
    %34 = tpu.matmul %33, %32, %cst_28 {dimension_numbers = #tpu.dot_dimension_numbers<[1], [0], [0], [1], [0, 0, 1, 1], [], []>} : vector<8x16xf32>, vector<16x96xf32>, vector<8x96xf32> -> vector<8x96xf32>
    %c0_29 = arith.constant 0 : index
    %c0_30 = arith.constant 0 : index
    %35 = vector.load %arg11[%c0_29, %c0_30] : memref<96x96xf32, #tpu.memory_space<vmem>>, vector<96x96xf32>
    %cst_31 = arith.constant dense<0.000000e+00> : vector<8x96xf32>
    %36 = tpu.matmul %34, %35, %cst_31 {dimension_numbers = #tpu.dot_dimension_numbers<[1], [0], [0], [1], [0, 0, 1, 1], [], []>} : vector<8x96xf32>, vector<96x96xf32>, vector<8x96xf32> -> vector<8x96xf32>
    %c0_32 = arith.constant 0 : index
    %c0_33 = arith.constant 0 : index
    %37 = vector.load %arg12[%c0_32, %c0_33] : memref<1x96xf32, #tpu.memory_space<vmem>>, vector<1x96xf32>
    %38 = vector.broadcast %37 : vector<1x96xf32> to vector<8x96xf32>
    %39 = arith.addf %36, %38 : vector<8x96xf32>
    %c0_34 = arith.constant 0 : index
    %c0_35 = arith.constant 0 : index
    %40 = vector.load %arg13[%c0_34, %c0_35] : memref<32x96xf32, #tpu.memory_space<vmem>>, vector<32x96xf32>
    %cst_36 = arith.constant dense<0.000000e+00> : vector<8x96xf32>
    %41 = tpu.matmul %11, %40, %cst_36 {dimension_numbers = #tpu.dot_dimension_numbers<[1], [0], [0], [1], [0, 0, 1, 1], [], []>} : vector<8x32xf32>, vector<32x96xf32>, vector<8x96xf32> -> vector<8x96xf32>
    %42 = arith.addf %39, %41 : vector<8x96xf32>
    %c0_37 = arith.constant 0 : index
    %c0_38 = arith.constant 0 : index
    %43 = vector.load %arg14[%c0_37, %c0_38] : memref<96x96xf32, #tpu.memory_space<vmem>>, vector<96x96xf32>
    %cst_39 = arith.constant dense<0.000000e+00> : vector<8x96xf32>
    %44 = tpu.matmul %42, %43, %cst_39 {dimension_numbers = #tpu.dot_dimension_numbers<[1], [0], [0], [1], [0, 0, 1, 1], [], []>} : vector<8x96xf32>, vector<96x96xf32>, vector<8x96xf32> -> vector<8x96xf32>
    %c0_40 = arith.constant 0 : index
    %c0_41 = arith.constant 0 : index
    %45 = vector.load %arg15[%c0_40, %c0_41] : memref<1x96xf32, #tpu.memory_space<vmem>>, vector<1x96xf32>
    %46 = vector.broadcast %45 : vector<1x96xf32> to vector<8x96xf32>
    %47 = arith.addf %44, %46 : vector<8x96xf32>
    %48 = arith.negf %47 : vector<8x96xf32>
    %49 = math.exp %48 : vector<8x96xf32>
    %cst_42 = arith.constant 1.000000e+00 : f32
    %50 = vector.broadcast %cst_42 : f32 to vector<8x96xf32>
    %51 = arith.addf %50, %49 : vector<8x96xf32>
    %52 = arith.divf %50, %51 : vector<8x96xf32>
    %53 = arith.mulf %47, %52 : vector<8x96xf32>
    %c0_43 = arith.constant 0 : index
    %c0_44 = arith.constant 0 : index
    %54 = vector.load %arg17[%c0_43, %c0_44] : memref<96x32xf32, #tpu.memory_space<vmem>>, vector<96x32xf32>
    %c0_45 = arith.constant 0 : index
    %c0_46 = arith.constant 0 : index
    %55 = vector.load %arg18[%c0_45, %c0_46] : memref<1x32xf32, #tpu.memory_space<vmem>>, vector<1x32xf32>
    %cst_47 = arith.constant dense<0.000000e+00> : vector<8x32xf32>
    %56 = tpu.matmul %53, %54, %cst_47 {dimension_numbers = #tpu.dot_dimension_numbers<[1], [0], [0], [1], [0, 0, 1, 1], [], []>} : vector<8x96xf32>, vector<96x32xf32>, vector<8x32xf32> -> vector<8x32xf32>
    %57 = vector.broadcast %55 : vector<1x32xf32> to vector<8x32xf32>
    %58 = arith.addf %56, %57 : vector<8x32xf32>
    %59 = arith.negf %58 : vector<8x32xf32>
    %60 = math.exp %59 : vector<8x32xf32>
    %cst_48 = arith.constant 1.000000e+00 : f32
    %61 = vector.broadcast %cst_48 : f32 to vector<8x32xf32>
    %62 = arith.addf %61, %60 : vector<8x32xf32>
    %63 = arith.divf %61, %62 : vector<8x32xf32>
    %64 = arith.mulf %58, %63 : vector<8x32xf32>
    %c0_49 = arith.constant 0 : index
    %c0_50 = arith.constant 0 : index
    %65 = vector.load %arg19[%c0_49, %c0_50] : memref<32x32xf32, #tpu.memory_space<vmem>>, vector<32x32xf32>
    %c0_51 = arith.constant 0 : index
    %c0_52 = arith.constant 0 : index
    %66 = vector.load %arg20[%c0_51, %c0_52] : memref<1x32xf32, #tpu.memory_space<vmem>>, vector<1x32xf32>
    %cst_53 = arith.constant dense<0.000000e+00> : vector<8x32xf32>
    %67 = tpu.matmul %64, %65, %cst_53 {dimension_numbers = #tpu.dot_dimension_numbers<[1], [0], [0], [1], [0, 0, 1, 1], [], []>} : vector<8x32xf32>, vector<32x32xf32>, vector<8x32xf32> -> vector<8x32xf32>
    %68 = vector.broadcast %66 : vector<1x32xf32> to vector<8x32xf32>
    %69 = arith.addf %67, %68 : vector<8x32xf32>
    %70 = arith.negf %69 : vector<8x32xf32>
    %71 = math.exp %70 : vector<8x32xf32>
    %cst_54 = arith.constant 1.000000e+00 : f32
    %72 = vector.broadcast %cst_54 : f32 to vector<8x32xf32>
    %73 = arith.addf %72, %71 : vector<8x32xf32>
    %74 = arith.divf %72, %73 : vector<8x32xf32>
    %75 = arith.mulf %69, %74 : vector<8x32xf32>
    %76 = arith.addf %75, %22 : vector<8x32xf32>
    %c0_55 = arith.constant 0 : index
    %c0_56 = arith.constant 0 : index
    %77 = vector.load %arg21[%c0_55, %c0_56] : memref<32x32xf32, #tpu.memory_space<vmem>>, vector<32x32xf32>
    %c0_57 = arith.constant 0 : index
    %c0_58 = arith.constant 0 : index
    %78 = vector.load %arg22[%c0_57, %c0_58] : memref<1x32xf32, #tpu.memory_space<vmem>>, vector<1x32xf32>
    %cst_59 = arith.constant dense<0.000000e+00> : vector<8x32xf32>
    %79 = tpu.matmul %76, %77, %cst_59 {dimension_numbers = #tpu.dot_dimension_numbers<[1], [0], [0], [1], [0, 0, 1, 1], [], []>} : vector<8x32xf32>, vector<32x32xf32>, vector<8x32xf32> -> vector<8x32xf32>
    %80 = vector.broadcast %78 : vector<1x32xf32> to vector<8x32xf32>
    %81 = arith.addf %79, %80 : vector<8x32xf32>
    %82 = arith.negf %81 : vector<8x32xf32>
    %83 = math.exp %82 : vector<8x32xf32>
    %cst_60 = arith.constant 1.000000e+00 : f32
    %84 = vector.broadcast %cst_60 : f32 to vector<8x32xf32>
    %85 = arith.addf %84, %83 : vector<8x32xf32>
    %86 = arith.divf %84, %85 : vector<8x32xf32>
    %87 = arith.mulf %81, %86 : vector<8x32xf32>
    %c0_61 = arith.constant 0 : index
    %c0_62 = arith.constant 0 : index
    %88 = vector.load %arg23[%c0_61, %c0_62] : memref<32x128xf32, #tpu.memory_space<vmem>>, vector<32x128xf32>
    %cst_63 = arith.constant dense<0.000000e+00> : vector<8x128xf32>
    %89 = tpu.matmul %87, %88, %cst_63 {dimension_numbers = #tpu.dot_dimension_numbers<[1], [0], [0], [1], [0, 0, 1, 1], [], []>} : vector<8x32xf32>, vector<32x128xf32>, vector<8x128xf32> -> vector<8x128xf32>
    %c0_64 = arith.constant 0 : index
    %c0_65 = arith.constant 0 : index
    %90 = vector.load %arg24[%c0_64, %c0_65] : memref<1x128xf32, #tpu.memory_space<vmem>>, vector<1x128xf32>
    %91 = vector.broadcast %90 : vector<1x128xf32> to vector<8x128xf32>
    %92 = arith.addf %89, %91 : vector<8x128xf32>
    %c0_66 = arith.constant 0 : index
    %c0_67 = arith.constant 0 : index
    %93 = vector.load %arg25[%c0_66, %c0_67] : memref<8x128xf32, #tpu.memory_space<vmem>>, vector<8x128xf32>
    tpu.vector_store %arg25[%c0_66, %c0_67], %92 {strides = array<i32>} : memref<8x128xf32, #tpu.memory_space<vmem>>, vector<8x128xf32>,
    return
  }
  func.func @transform_0(%arg0: i32) -> (i32, i32) {
    %c0_i32 = arith.constant 0 : i32
    %c0_i32_0 = arith.constant 0 : i32
    %c0_i32_1 = arith.constant 0 : i32
    return %c0_i32, %c0_i32_0 : i32, i32
  }
  func.func @transform_1(%arg0: i32) -> (i32, i32) {
    %c0_i32 = arith.constant 0 : i32
    %c0_i32_0 = arith.constant 0 : i32
    %c0_i32_1 = arith.constant 0 : i32
    return %c0_i32, %c0_i32_0 : i32, i32
  }
  func.func @transform_2(%arg0: i32) -> (i32, i32) {
    %c0_i32 = arith.constant 0 : i32
    %c0_i32_0 = arith.constant 0 : i32
    %c0_i32_1 = arith.constant 0 : i32
    return %c0_i32, %c0_i32_0 : i32, i32
  }
  func.func @transform_3(%arg0: i32) -> (i32, i32) {
    %c0_i32 = arith.constant 0 : i32
    %c0_i32_0 = arith.constant 0 : i32
    %c0_i32_1 = arith.constant 0 : i32
    return %c0_i32, %c0_i32_0 : i32, i32
  }
  func.func @transform_4(%arg0: i32) -> (i32, i32) {
    %c0_i32 = arith.constant 0 : i32
    %c0_i32_0 = arith.constant 0 : i32
    %c0_i32_1 = arith.constant 0 : i32
    return %c0_i32, %c0_i32_0 : i32, i32
  }
  func.func @transform_5(%arg0: i32) -> (i32, i32) {
    %c0_i32 = arith.constant 0 : i32
    %c0_i32_0 = arith.constant 0 : i32
    %c0_i32_1 = arith.constant 0 : i32
    return %c0_i32, %c0_i32_0 : i32, i32
  }
  func.func @transform_6(%arg0: i32) -> (i32, i32) {
    %c0_i32 = arith.constant 0 : i32
    %c0_i32_0 = arith.constant 0 : i32
    %c0_i32_1 = arith.constant 0 : i32
    return %c0_i32, %c0_i32_0 : i32, i32
  }
  func.func @transform_7(%arg0: i32) -> (i32, i32) {
    %c0_i32 = arith.constant 0 : i32
    %c0_i32_0 = arith.constant 0 : i32
    %c0_i32_1 = arith.constant 0 : i32
    return %c0_i32, %c0_i32_0 : i32, i32
  }
  func.func @transform_8(%arg0: i32) -> (i32, i32) {
    %c0_i32 = arith.constant 0 : i32
    %c0_i32_0 = arith.constant 0 : i32
    %c0_i32_1 = arith.constant 0 : i32
    return %c0_i32, %c0_i32_0 : i32, i32
  }
  func.func @transform_9(%arg0: i32) -> (i32, i32) {
    %c0_i32 = arith.constant 0 : i32
    %c0_i32_0 = arith.constant 0 : i32
    %c0_i32_1 = arith.constant 0 : i32
    return %c0_i32, %c0_i32_0 : i32, i32
  }
  func.func @transform_10(%arg0: i32) -> (i32, i32) {
    %c0_i32 = arith.constant 0 : i32
    %c0_i32_0 = arith.constant 0 : i32
    %c0_i32_1 = arith.constant 0 : i32
    return %c0_i32, %c0_i32_0 : i32, i32
  }
  func.func @transform_11(%arg0: i32) -> (i32, i32) {
    %c0_i32 = arith.constant 0 : i32
    %c0_i32_0 = arith.constant 0 : i32
    %c0_i32_1 = arith.constant 0 : i32
    return %c0_i32, %c0_i32_0 : i32, i32
  }
  func.func @transform_12(%arg0: i32) -> (i32, i32) {
    %c0_i32 = arith.constant 0 : i32
    %c0_i32_0 = arith.constant 0 : i32
    %c0_i32_1 = arith.constant 0 : i32
    return %c0_i32, %c0_i32_0 : i32, i32
  }
  func.func @transform_13(%arg0: i32) -> (i32, i32) {
    %c0_i32 = arith.constant 0 : i32
    %c0_i32_0 = arith.constant 0 : i32
    %c0_i32_1 = arith.constant 0 : i32
    return %c0_i32, %c0_i32_0 : i32, i32
  }
  func.func @transform_14(%arg0: i32) -> (i32, i32) {
    %c0_i32 = arith.constant 0 : i32
    %c0_i32_0 = arith.constant 0 : i32
    %c0_i32_1 = arith.constant 0 : i32
    return %c0_i32, %c0_i32_0 : i32, i32
  }
  func.func @transform_15(%arg0: i32) -> (i32, i32) {
    %c0_i32 = arith.constant 0 : i32
    %c0_i32_0 = arith.constant 0 : i32
    %c0_i32_1 = arith.constant 0 : i32
    return %c0_i32, %c0_i32_0 : i32, i32
  }
  func.func @transform_16(%arg0: i32) -> (i32, i32) {
    %c0_i32 = arith.constant 0 : i32
    %c0_i32_0 = arith.constant 0 : i32
    %c0_i32_1 = arith.constant 0 : i32
    return %c0_i32, %c0_i32_0 : i32, i32
  }
  func.func @transform_17(%arg0: i32) -> (i32, i32) {
    %c0_i32 = arith.constant 0 : i32
    %c0_i32_0 = arith.constant 0 : i32
    %c0_i32_1 = arith.constant 0 : i32
    return %c0_i32, %c0_i32_0 : i32, i32
  }
  func.func @transform_18(%arg0: i32) -> (i32, i32) {
    %c0_i32 = arith.constant 0 : i32
    %c0_i32_0 = arith.constant 0 : i32
    %c0_i32_1 = arith.constant 0 : i32
    return %c0_i32, %c0_i32_0 : i32, i32
  }
  func.func @transform_19(%arg0: i32) -> (i32, i32) {
    %c0_i32 = arith.constant 0 : i32
    %c0_i32_0 = arith.constant 0 : i32
    %c0_i32_1 = arith.constant 0 : i32
    return %c0_i32, %c0_i32_0 : i32, i32
  }
  func.func @transform_20(%arg0: i32) -> (i32, i32) {
    %c0_i32 = arith.constant 0 : i32
    %c0_i32_0 = arith.constant 0 : i32
    %c0_i32_1 = arith.constant 0 : i32
    return %c0_i32, %c0_i32_0 : i32, i32
  }
  func.func @transform_21(%arg0: i32) -> (i32, i32) {
    %c0_i32 = arith.constant 0 : i32
    %c0_i32_0 = arith.constant 0 : i32
    %c0_i32_1 = arith.constant 0 : i32
    return %c0_i32, %c0_i32_0 : i32, i32
  }
  func.func @transform_22(%arg0: i32) -> (i32, i32) {
    %c0_i32 = arith.constant 0 : i32
    %c0_i32_0 = arith.constant 0 : i32
    %c0_i32_1 = arith.constant 0 : i32
    return %c0_i32, %c0_i32_0 : i32, i32
  }
  func.func @transform_23(%arg0: i32) -> (i32, i32) {
    %c0_i32 = arith.constant 0 : i32
    %c0_i32_0 = arith.constant 0 : i32
    %c0_i32_1 = arith.constant 0 : i32
    return %c0_i32, %c0_i32_0 : i32, i32
  }
  func.func @transform_24(%arg0: i32) -> (i32, i32) {
    %c0_i32 = arith.constant 0 : i32
    %c0_i32_0 = arith.constant 0 : i32
    %c0_i32_1 = arith.constant 0 : i32
    return %c0_i32, %c0_i32_0 : i32, i32
  }
}

</mosaic_0001>

<bundles_post_ra>
// kernel: tpu_custom_call.1
= control target key start
LH: loop header
LB: loop body
LE: loop exit
PB: predicated region body
PF: predicated region fallthrough
CT: control target
= control target key end

     0   :  { %s2926_s0 = inlined_call_operand.hbm [shape: f32[8,32], index: 0, kind: input, shape index: {}]   ;;  %s2927_s1 = inlined_call_operand.hbm [shape: f32[16,64], index: 1, kind: input, shape index: {}]   ;;  %s2928_s2 = inlined_call_operand.vmem [shape: f32[16,8], index: 2, kind: input, shape index: {}]   ;;  %s2929_s3 = inlined_call_operand.hbm [shape: f32[8,16], index: 3, kind: input, shape index: {}]   ;;  %s2930_s4 = inlined_call_operand.hbm [shape: f32[32,32], index: 4, kind: input, shape index: {}]   ;;  %s2931_s5 = inlined_call_operand.hbm [shape: f32[1,32], index: 5, kind: input, shape index: {}]   ;;  %s2932_s6 = inlined_call_operand.hbm [shape: f32[32,32], index: 6, kind: input, shape index: {}]   ;;  %s2933_s7 = inlined_call_operand.hbm [shape: f32[1,32], index: 7, kind: input, shape index: {}]   ;;  %s2934_s8 = inlined_call_operand.vmem [shape: f32[64,48], index: 8, kind: input, shape index: {}]   ;;  %s2935_s9 = inlined_call_operand.vmem [shape: f32[48,96], index: 9, kind: input, shape index: {}]   ;;  %s2936_s10 = inlined_call_operand.vmem [shape: f32[96,96], index: 10, kind: input, shape index: {}]   ;;  %s2937_s11 = inlined_call_operand.hbm [shape: f32[1,96], index: 11, kind: input, shape index: {}]   ;;  %s2938_s12 = inlined_call_operand.hbm [shape: f32[32,96], index: 12, kind: input, shape index: {}]   ;;  %s2939_s13 = inlined_call_operand.vmem [shape: f32[96,96], index: 13, kind: input, shape index: {}]   ;;  %s2940_s14 = inlined_call_operand.hbm [shape: f32[1,96], index: 14, kind: input, shape index: {}]   ;;  %s2941_s15 = inlined_call_operand.vmem [shape: f32[32,96], index: 15, kind: input, shape index: {}]   ;;  %s2942_s16 = inlined_call_operand.vmem [shape: f32[96,32], index: 16, kind: input, shape index: {}]   ;;  %s2943_s17 = inlined_call_operand.vmem [shape: f32[1,32], index: 17, kind: input, shape index: {}]   ;;  %s2944_s18 = inlined_call_operand.hbm [shape: f32[32,32], index: 18, kind: input, shape index: {}]   ;;  %s2945_s19 = inlined_call_operand.vmem [shape: f32[1,32], index: 19, kind: input, shape index: {}]   ;;  %s2946_s20 = inlined_call_operand.hbm [shape: f32[32,32], index: 20, kind: input, shape index: {}]   ;;  %s2947_s21 = inlined_call_operand.vmem [shape: f32[1,32], index: 21, kind: input, shape index: {}]   ;;  %s2948_s22 = inlined_call_operand.hbm [shape: f32[32,128], index: 22, kind: input, shape index: {}]   ;;  %s2949_s23 = inlined_call_operand.vmem [shape: f32[1,128], index: 23, kind: input, shape index: {}]   ;;  %s2950_s24 = inlined_call_operand.hbm [shape: f32[8,128], index: 24, kind: output, shape index: {}]  }
   0x1   :  { %2961 = sst [smem:[#allocation32_spill]] %s2926_s0 }
   0x2   :  { %2962 = sst [smem:[#allocation33_spill]] %s2927_s1 }
   0x3   :  { %2963 = sst [smem:[#allocation34_spill]] %s2928_s2 }
   0x4   :  { %2964 = sst [smem:[#allocation35_spill]] %s2929_s3 }
   0x5   :  { %2965 = sst [smem:[#allocation36_spill]] %s2930_s4 }
   0x6   :  { %2966 = sst [smem:[#allocation37_spill]] %s2931_s5 }
   0x7   :  { %2967 = sst [smem:[#allocation38_spill]] %s2932_s6 }
   0x8   :  { %2968 = sst [smem:[#allocation39_spill]] %s2933_s7 }
   0x9   :  { %2969 = sst [smem:[#allocation40_spill]] %s2934_s8 }
   0xa   :  { %2970 = sst [smem:[#allocation41_spill]] %s2947_s21 }
   0xb   :  { %2971 = sst [smem:[#allocation42_spill]] %s2949_s23 }
   0xc   :  { %2972 = sst [smem:[#allocation43_spill]] %s2950_s24 }
   0xd   :  { %29 = vsyncpa [#allocation3], 0 }
   0xe   :  { %30 = vsyncpa [#allocation6], 0 }
   0xf   :  { %31 = vsyncpa [#allocation9], 0 }
  0x10   :  { %32 = vsyncpa [#allocation12], 0 }
  0x11   :  { %33 = vsyncpa [#allocation15], 0 }
  0x12   :  { %34 = vsyncpa [#allocation18], 0 }
  0x13   :  { %35 = vsyncpa [#allocation21], 0 }
  0x14   :  { %36 = vsyncpa [#allocation4], 0  ;;  %s2341_s5 = smov [#allocation5]   ;;  %s2973_s6 = sld [smem:[#allocation33_spill]] }
  0x15   :  { %s52_s26 = sshll.u32 %s2341_s5, 4  ;;  %s53_s26 = int_to_ptr.vmem [resolvable:$true] %s52_s26 }
  0x1a   :  { %s2017_s2 = scalar_lea.hbm %s2973_s6, 256 }
  0x1b   :  { %p2018_p0 = scmp.ne.s32.totalorder %s2973_s6, %s2017_s2  ;;  %p2021_p1 = scmp.lt.u32.totalorder %s2017_s2, %s2973_s6 }
  0x1d   :  { %p2023_p2 = pnand %p2021_p1, %p2018_p0 }
  0x1f   :  { %2026 = shalt.err (!%p2023_p2)
}
  0x20   :  { %s2027_s3 = scalar_lea.vmem %s53_s26, 256  ;;  %p2032_p4 = scmp.lt.s32.totalorder %s53_s26, %s53_s26 }
  0x21   :  { %p2028_p3 = scmp.ne.s32.totalorder %s53_s26, %s2027_s3  ;;  %p2033_p5 = scmp.lt.s32.totalorder %s2027_s3, %s2027_s3 }
  0x23   :  { %p2034_p6 = por %p2033_p5, %p2032_p4 }
  0x25   :  { %p2035_p7 = pnand %p2034_p6, %p2028_p3 }
  0x27   :  { %2038 = shalt.err (!%p2035_p7)
}
  0x28   :  { %s2342_s25 = smov 128   ;;  %s2343_s8 = smov 8  }
  0x29   :  { %58 = dma.hbm_to_vmem [thread:$0]  %s2973_s6, 256, %s53_s26, [#allocation6], %s2342_s25, %s2342_s25, %s2343_s8  }
  0x2a   :  { %s2344_s5 = smov [#allocation8]   ;;  %s2345_s28 = smov [#allocation11]  }
  0x2b   :  { %s76_s27 = sshll.u32 %s2344_s5, 4  ;;  %s98_s2 = sshll.u32 %s2345_s28, 4  ;;  %s77_s27 = int_to_ptr.vmem [resolvable:$true] %s76_s27  ;;  %s99_s2 = int_to_ptr.vmem [resolvable:$true] %s98_s2 }
  0x2c   :  { %s2974_s7 = sld [smem:[#allocation36_spill]] }
  0x32   :  { %s2039_s30 = scalar_lea.hbm %s2974_s7, 512 }
  0x33   :  { %p2040_p8 = scmp.ne.s32.totalorder %s2974_s7, %s2039_s30  ;;  %p2043_p9 = scmp.lt.u32.totalorder %s2039_s30, %s2974_s7 }
  0x35   :  { %p2045_p10 = pnand %p2043_p9, %p2040_p8 }
  0x37   :  { %2048 = shalt.err (!%p2045_p10)
}
  0x38   :  { %s2049_s26 = scalar_lea.vmem %s77_s27, 512  ;;  %p2054_p12 = scmp.lt.s32.totalorder %s77_s27, %s77_s27 }
  0x39   :  { %p2050_p11 = scmp.ne.s32.totalorder %s77_s27, %s2049_s26  ;;  %p2055_p13 = scmp.lt.s32.totalorder %s2049_s26, %s2049_s26 }
  0x3b   :  { %p2056_p0 = por %p2055_p13, %p2054_p12 }
  0x3d   :  { %p2057_p1 = pnand %p2056_p0, %p2050_p11 }
  0x3f   :  { %2060 = shalt.err (!%p2057_p1)
}
  0x40   :  { %82 = dma.hbm_to_vmem [thread:$0]  %s2974_s7, 512, %s77_s27, [#allocation9], %s2342_s25, %s2342_s25, %s2343_s8  }
  0x41   :  { %s2975_s23 = sld [smem:[#allocation38_spill]] }
  0x47   :  { %s2061_s1 = scalar_lea.hbm %s2975_s23, 512 }
  0x48   :  { %p2062_p2 = scmp.ne.s32.totalorder %s2975_s23, %s2061_s1  ;;  %p2065_p3 = scmp.lt.u32.totalorder %s2061_s1, %s2975_s23 }
  0x4a   :  { %p2067_p4 = pnand %p2065_p3, %p2062_p2 }
  0x4c   :  { %2070 = shalt.err (!%p2067_p4)
}
  0x4d   :  { %s2071_s30 = scalar_lea.vmem %s99_s2, 512  ;;  %p2076_p6 = scmp.lt.s32.totalorder %s99_s2, %s99_s2 }
  0x4e   :  { %p2072_p5 = scmp.ne.s32.totalorder %s99_s2, %s2071_s30  ;;  %p2077_p7 = scmp.lt.s32.totalorder %s2071_s30, %s2071_s30 }
  0x50   :  { %p2078_p8 = por %p2077_p7, %p2076_p6 }
  0x52   :  { %p2079_p9 = pnand %p2078_p8, %p2072_p5 }
  0x54   :  { %2082 = shalt.err (!%p2079_p9)
}
  0x55   :  { %104 = dma.hbm_to_vmem [thread:$0]  %s2975_s23, 512, %s99_s2, [#allocation12], %s2342_s25, %s2342_s25, %s2343_s8  }
  0x56   :  { %s2346_s3 = smov [#allocation14]   ;;  %s2347_s6 = smov [#allocation17]  }
  0x57   :  { %s127_s26 = sshll.u32 %s2346_s3, 4  ;;  %s151_s4 = sshll.u32 %s2347_s6, 4  ;;  %s128_s26 = int_to_ptr.vmem [resolvable:$true] %s127_s26  ;;  %s152_s4 = int_to_ptr.vmem [resolvable:$true] %s151_s4 }
  0x58   :  { %s2083_s1 = scalar_lea.hbm %s2937_s11, 16 }
  0x59   :  { %p2084_p10 = scmp.ne.s32.totalorder %s2937_s11, %s2083_s1  ;;  %p2087_p11 = scmp.lt.u32.totalorder %s2083_s1, %s2937_s11 }
  0x5b   :  { %p2089_p12 = pnand %p2087_p11, %p2084_p10 }
  0x5d   :  { %2092 = shalt.err (!%p2089_p12)
}
  0x5e   :  { %s2093_s2 = scalar_lea.vmem %s128_s26, 16  ;;  %s2097_s23 = scalar_lea.vmem %s128_s26, 32 }
  0x5f   :  { %p2094_p13 = scmp.ne.s32.totalorder %s128_s26, %s2093_s2  ;;  %p2098_p0 = scmp.lt.s32.totalorder %s128_s26, %s128_s26 }
  0x60   :  { %p2099_p1 = scmp.lt.s32.totalorder %s2097_s23, %s2093_s2 }
  0x62   :  { %p2100_p2 = por %p2099_p1, %p2098_p0 }
  0x64   :  { %p2101_p3 = pnand %p2100_p2, %p2094_p13 }
  0x66   :  { %2104 = shalt.err (!%p2101_p3)
}
  0x67   :  { %130 = dma.hbm_to_vmem [thread:$0]  %s2937_s11, 16, %s128_s26, [#allocation15]  }
  0x68   :  { %s2105_s6 = scalar_lea.hbm %s2940_s14, 16 }
  0x69   :  { %p2106_p4 = scmp.ne.s32.totalorder %s2940_s14, %s2105_s6  ;;  %p2109_p5 = scmp.lt.u32.totalorder %s2105_s6, %s2940_s14 }
  0x6b   :  { %p2111_p6 = pnand %p2109_p5, %p2106_p4 }
  0x6d   :  { %2114 = shalt.err (!%p2111_p6)
}
  0x6e   :  { %s2115_s28 = scalar_lea.vmem %s152_s4, 16  ;;  %s2119_s29 = scalar_lea.vmem %s152_s4, 32 }
  0x6f   :  { %p2116_p7 = scmp.ne.s32.totalorder %s152_s4, %s2115_s28  ;;  %p2120_p8 = scmp.lt.s32.totalorder %s152_s4, %s152_s4 }
  0x70   :  { %p2121_p9 = scmp.lt.s32.totalorder %s2119_s29, %s2115_s28 }
  0x72   :  { %p2122_p10 = por %p2121_p9, %p2120_p8 }
  0x74   :  { %p2123_p11 = pnand %p2122_p10, %p2116_p7 }
  0x76   :  { %2126 = shalt.err (!%p2123_p11)
}
  0x77   :  { %154 = dma.hbm_to_vmem [thread:$0]  %s2940_s14, 16, %s152_s4, [#allocation18]  }
  0x78   :  { %s2348_s0 = smov [#allocation20]   ;;  %s2349_s23 = smov [#allocation2]  }
  0x79   :  { %s180_s2 = sshll.u32 %s2348_s0, 4  ;;  %s43_s30 = sshll.u32 %s2349_s23, 4  ;;  %s181_s2 = int_to_ptr.vmem [resolvable:$true] %s180_s2  ;;  %s44_s30 = int_to_ptr.vmem [resolvable:$true] %s43_s30 }
  0x7a   :  { %s2127_s3 = scalar_lea.hbm %s2946_s20, 512 }
  0x7b   :  { %p2128_p12 = scmp.ne.s32.totalorder %s2946_s20, %s2127_s3  ;;  %p2131_p13 = scmp.lt.u32.totalorder %s2127_s3, %s2946_s20 }
  0x7d   :  { %p2133_p0 = pnand %p2131_p13, %p2128_p12 }
  0x7f   :  { %2136 = shalt.err (!%p2133_p0)
}
  0x80   :  { %s2137_s14 = scalar_lea.vmem %s181_s2, 512  ;;  %p2142_p2 = scmp.lt.s32.totalorder %s181_s2, %s181_s2 }
  0x81   :  { %p2138_p1 = scmp.ne.s32.totalorder %s181_s2, %s2137_s14  ;;  %p2143_p3 = scmp.lt.s32.totalorder %s2137_s14, %s2137_s14 }
  0x83   :  { %p2144_p4 = por %p2143_p3, %p2142_p2 }
  0x85   :  { %p2145_p5 = pnand %p2144_p4, %p2138_p1 }
  0x87   :  { %2148 = shalt.err (!%p2145_p5)
}
  0x88   :  { %186 = dma.hbm_to_vmem [thread:$0]  %s2946_s20, 512, %s181_s2, [#allocation21], %s2342_s25, %s2342_s25, %s2343_s8  }
  0x89   :  { %s2976_s11 = sld [smem:[#allocation32_spill]] }
  0x8f   :  { %s2149_s26 = scalar_lea.hbm %s2976_s11, 128 }
  0x90   :  { %p2150_p6 = scmp.ne.s32.totalorder %s2976_s11, %s2149_s26  ;;  %p2153_p7 = scmp.lt.u32.totalorder %s2149_s26, %s2976_s11 }
  0x92   :  { %p2155_p8 = pnand %p2153_p7, %p2150_p6 }
  0x94   :  { %2158 = shalt.err (!%p2155_p8)
}
  0x95   :  { %s2159_s3 = scalar_lea.vmem %s44_s30, 128  ;;  %p2164_p10 = scmp.lt.s32.totalorder %s44_s30, %s44_s30 }
  0x96   :  { %p2160_p9 = scmp.ne.s32.totalorder %s44_s30, %s2159_s3  ;;  %p2165_p11 = scmp.lt.s32.totalorder %s2159_s3, %s2159_s3 }
  0x98   :  { %p2166_p12 = por %p2165_p11, %p2164_p10 }
  0x9a   :  { %p2167_p13 = pnand %p2166_p12, %p2160_p9 }
  0x9c   :  { %2170 = shalt.err (!%p2167_p13)
}
  0x9d   :  { %46 = dma.hbm_to_vmem [thread:$0]  %s2976_s11, 128, %s44_s30, [#allocation3]  }
  0x9e   :  { %s2350_s6 = smov [#allocation7]   ;;  %s2351_s21 = smov [#allocation10]  }
  0x9f   :  { %s67_s24 = sshll.u32 %s2350_s6, 4  ;;  %s89_s1 = sshll.u32 %s2351_s21, 4  ;;  %s68_s24 = int_to_ptr.vmem [resolvable:$true] %s67_s24  ;;  %s90_s1 = int_to_ptr.vmem [resolvable:$true] %s89_s1 }
  0xa0   :  { %s2977_s5 = sld [smem:[#allocation35_spill]] }
  0xa6   :  { %s2171_s28 = scalar_lea.hbm %s2977_s5, 128 }
  0xa7   :  { %p2172_p0 = scmp.ne.s32.totalorder %s2977_s5, %s2171_s28  ;;  %p2175_p1 = scmp.lt.u32.totalorder %s2171_s28, %s2977_s5 }
  0xa9   :  { %p2177_p2 = pnand %p2175_p1, %p2172_p0 }
  0xab   :  { %2180 = shalt.err (!%p2177_p2)
}
  0xac   :  { %s2181_s30 = scalar_lea.vmem %s68_s24, 128  ;;  %p2186_p4 = scmp.lt.s32.totalorder %s68_s24, %s68_s24 }
  0xad   :  { %p2182_p3 = scmp.ne.s32.totalorder %s68_s24, %s2181_s30  ;;  %p2187_p5 = scmp.lt.s32.totalorder %s2181_s30, %s2181_s30 }
  0xaf   :  { %p2188_p6 = por %p2187_p5, %p2186_p4 }
  0xb1   :  { %p2189_p7 = pnand %p2188_p6, %p2182_p3 }
  0xb3   :  { %2192 = shalt.err (!%p2189_p7)
}
  0xb4   :  { %70 = dma.hbm_to_vmem [thread:$0]  %s2977_s5, 128, %s68_s24, [#allocation6]  }
  0xb5   :  { %s2978_s20 = sld [smem:[#allocation37_spill]] }
  0xbb   :  { %s2193_s2 = scalar_lea.hbm %s2978_s20, 16 }
  0xbc   :  { %p2194_p8 = scmp.ne.s32.totalorder %s2978_s20, %s2193_s2  ;;  %p2197_p9 = scmp.lt.u32.totalorder %s2193_s2, %s2978_s20 }
  0xbe   :  { %p2199_p10 = pnand %p2197_p9, %p2194_p8 }
  0xc0   :  { %2202 = shalt.err (!%p2199_p10)
}
  0xc1   :  { %s2203_s28 = scalar_lea.vmem %s90_s1, 16  ;;  %s2207_s29 = scalar_lea.vmem %s90_s1, 32 }
  0xc2   :  { %p2204_p11 = scmp.ne.s32.totalorder %s90_s1, %s2203_s28  ;;  %p2208_p12 = scmp.lt.s32.totalorder %s90_s1, %s90_s1 }
  0xc3   :  { %p2209_p13 = scmp.lt.s32.totalorder %s2207_s29, %s2203_s28 }
  0xc5   :  { %p2210_p0 = por %p2209_p13, %p2208_p12 }
  0xc7   :  { %p2211_p1 = pnand %p2210_p0, %p2204_p11 }
  0xc9   :  { %2214 = shalt.err (!%p2211_p1)
}
  0xca   :  { %92 = dma.hbm_to_vmem [thread:$0]  %s2978_s20, 16, %s90_s1, [#allocation9]  }
  0xcb   :  { %s2352_s26 = smov [#allocation13]   ;;  %s2353_s23 = smov [#allocation16]  }
  0xcc   :  { %s111_s0 = sshll.u32 %s2352_s26, 4  ;;  %s136_s30 = sshll.u32 %s2353_s23, 4  ;;  %s112_s0 = int_to_ptr.vmem [resolvable:$true] %s111_s0  ;;  %s137_s30 = int_to_ptr.vmem [resolvable:$true] %s136_s30 }
  0xcd   :  { %s2979_s7 = sld [smem:[#allocation39_spill]] }
  0xd3   :  { %s2215_s3 = scalar_lea.hbm %s2979_s7, 16 }
  0xd4   :  { %p2216_p2 = scmp.ne.s32.totalorder %s2979_s7, %s2215_s3  ;;  %p2219_p3 = scmp.lt.u32.totalorder %s2215_s3, %s2979_s7 }
  0xd6   :  { %p2221_p4 = pnand %p2219_p3, %p2216_p2 }
  0xd8   :  { %2224 = shalt.err (!%p2221_p4)
}
  0xd9   :  { %s2225_s1 = scalar_lea.vmem %s112_s0, 16  ;;  %s2229_s20 = scalar_lea.vmem %s112_s0, 32 }
  0xda   :  { %p2226_p5 = scmp.ne.s32.totalorder %s112_s0, %s2225_s1  ;;  %p2230_p6 = scmp.lt.s32.totalorder %s112_s0, %s112_s0 }
  0xdb   :  { %p2231_p7 = scmp.lt.s32.totalorder %s2229_s20, %s2225_s1 }
  0xdd   :  { %p2232_p8 = por %p2231_p7, %p2230_p6 }
  0xdf   :  { %p2233_p9 = pnand %p2232_p8, %p2226_p5 }
  0xe1   :  { %2236 = shalt.err (!%p2233_p9)
}
  0xe2   :  { %114 = dma.hbm_to_vmem [thread:$0]  %s2979_s7, 16, %s112_s0, [#allocation12]  }
  0xe3   :  { %s2237_s5 = scalar_lea.hbm %s2938_s12, 512 }
  0xe4   :  { %p2238_p10 = scmp.ne.s32.totalorder %s2938_s12, %s2237_s5  ;;  %p2241_p11 = scmp.lt.u32.totalorder %s2237_s5, %s2938_s12 }
  0xe6   :  { %p2243_p12 = pnand %p2241_p11, %p2238_p10 }
  0xe8   :  { %2246 = shalt.err (!%p2243_p12)
}
  0xe9   :  { %s2247_s3 = scalar_lea.vmem %s137_s30, 512  ;;  %p2252_p0 = scmp.lt.s32.totalorder %s137_s30, %s137_s30 }
  0xea   :  { %p2248_p13 = scmp.ne.s32.totalorder %s137_s30, %s2247_s3  ;;  %p2253_p1 = scmp.lt.s32.totalorder %s2247_s3, %s2247_s3 }
  0xec   :  { %p2254_p2 = por %p2253_p1, %p2252_p0 }
  0xee   :  { %p2255_p3 = pnand %p2254_p2, %p2248_p13 }
  0xf0   :  { %2258 = shalt.err (!%p2255_p3)
}
  0xf1   :  { %142 = dma.hbm_to_vmem [thread:$0]  %s2938_s12, 512, %s137_s30, [#allocation15], %s2342_s25, %s2342_s25, %s2343_s8  }
  0xf2   :  { %s2354_s2 = smov [#allocation19]   ;;  %s2355_s21 = smov [#allocation22]  }
  0xf3   :  { %s166_s6 = sshll.u32 %s2354_s2, 4  ;;  %s194_s14 = sshll.u32 %s2355_s21, 4  ;;  %s167_s6 = int_to_ptr.vmem [resolvable:$true] %s166_s6  ;;  %s195_s14 = int_to_ptr.vmem [resolvable:$true] %s194_s14 }
  0xf4   :  { %s2259_s4 = scalar_lea.hbm %s2944_s18, 512 }
  0xf5   :  { %p2260_p4 = scmp.ne.s32.totalorder %s2944_s18, %s2259_s4  ;;  %p2263_p5 = scmp.lt.u32.totalorder %s2259_s4, %s2944_s18 }
  0xf7   :  { %p2265_p6 = pnand %p2263_p5, %p2260_p4 }
  0xf9   :  { %2268 = shalt.err (!%p2265_p6)
}
  0xfa   :  { %s2269_s12 = scalar_lea.vmem %s167_s6, 512  ;;  %p2274_p8 = scmp.lt.s32.totalorder %s167_s6, %s167_s6 }
  0xfb   :  { %p2270_p7 = scmp.ne.s32.totalorder %s167_s6, %s2269_s12  ;;  %p2275_p9 = scmp.lt.s32.totalorder %s2269_s12, %s2269_s12 }
  0xfd   :  { %p2276_p10 = por %p2275_p9, %p2274_p8 }
  0xff   :  { %p2277_p11 = pnand %p2276_p10, %p2270_p7 }
 0x101   :  { %2280 = shalt.err (!%p2277_p11)
}
 0x102   :  { %172 = dma.hbm_to_vmem [thread:$0]  %s2944_s18, 512, %s167_s6, [#allocation18], %s2342_s25, %s2342_s25, %s2343_s8  }
 0x103   :  { %s2281_s27 = scalar_lea.hbm %s2948_s22, 512 }
 0x104   :  { %p2282_p12 = scmp.ne.s32.totalorder %s2948_s22, %s2281_s27  ;;  %p2285_p13 = scmp.lt.u32.totalorder %s2281_s27, %s2948_s22 }
 0x106   :  { %p2287_p0 = pnand %p2285_p13, %p2282_p12 }
 0x108   :  { %2290 = shalt.err (!%p2287_p0)
}
 0x109   :  { %s2291_s21 = scalar_lea.vmem %s195_s14, 512  ;;  %p2296_p2 = scmp.lt.s32.totalorder %s195_s14, %s195_s14 }
 0x10a   :  { %p2292_p1 = scmp.ne.s32.totalorder %s195_s14, %s2291_s21  ;;  %p2297_p3 = scmp.lt.s32.totalorder %s2291_s21, %s2291_s21 }
 0x10c   :  { %p2298_p4 = por %p2297_p3, %p2296_p2 }
 0x10e   :  { %p2299_p5 = pnand %p2298_p4, %p2292_p1 }
 0x110   :  { %2302 = shalt.err (!%p2299_p5)
}
 0x111   :  { %200 = dma.hbm_to_vmem [thread:$0]  %s2948_s22, 512, %s195_s14, [#allocation21], %s2342_s25, %s2342_s25, %s2343_s8  }
 0x112   :  { %2325 = dma.done.wait [#allocation3], 128  }
 0x113   :  { %2326 = vsyncadd [#allocation3], 4294967168 }
 0x114   :  { %2327 = dma.done.wait [#allocation6], 384  }
 0x115   :  { %2328 = vsyncadd [#allocation6], 4294966912 }
 0x116   :  { %2329 = dma.done.wait [#allocation9], 528  }
 0x117   :  { %2330 = vsyncadd [#allocation9], 4294966768 }
 0x118   :  { %2331 = dma.done.wait [#allocation12], 528  }
 0x119   :  { %2332 = vsyncadd [#allocation12], 4294966768 }
 0x11a   :  { %2333 = dma.done.wait [#allocation15], 528  }
 0x11b   :  { %2334 = vsyncadd [#allocation15], 4294966768 }
 0x11c   :  { %2335 = dma.done.wait [#allocation18], 528  }
 0x11d   :  { %2336 = vsyncadd [#allocation18], 4294966768 }
 0x11e   :  { %2337 = dma.done.wait [#allocation21], 1024  }
 0x11f   :  { %2338 = vsyncadd [#allocation21], 4294966272  ;;  %v2356_v0 = vmov 0.0|0.0   ;;  %vm2357_vm0 = vmmov 0   ;;  %v2358_v1 = vmov 0.0   ;;  %v243_v2 = vld [vmem:[#allocation8] sm:$0xff] }
 0x120   :  { %1842 = vmatprep.subr.bf16.mxu0 %v2356_v0  ;;  %1646 = vmatprep.mubr.msk.f32.mxu0 %vm2357_vm0, %v2358_v1  ;;  %v244_v3 = vld [vmem:[#allocation8 + $0x8] sm:$0xff]  ;;  %v245_v4 = vld [vmem:[#allocation8 + $0x10] sm:$0xff]  ;;  %v246_v6 = vld [vmem:[#allocation8 + $0x18] sm:$0xff]  ;;  %s2980_s8 = sld [smem:[#allocation40_spill]]  ;;  %vm254_vm1 = vcmask 261120   ;;  %vm433_vm2 = vcmask 523264  }
 0x121   :  { %1848 = vmatprep.subr.bf16.mxu1 %v2356_v0  ;;  %1657 = vmatprep.mubr.msk.f32.mxu1 %vm2357_vm0, %v2358_v1  ;;  %v1843_v5 = vpack.c.bf16 %v244_v3, %v243_v2  ;;  %v1846_v9 = vpack.c.bf16 %v246_v6, %v245_v4  ;;  %v335_v13 = vld [vmem:[#allocation11] sm:$0xff]  ;;  %v336_v14 = vld [vmem:[#allocation11 + $0x8] sm:$0xff]  ;;  %v337_v15 = vld [vmem:[#allocation11 + $0x10] sm:$0xff]  ;;  %vm521_vm3 = vcmask 392192   ;;  %vm605_vm4 = vcmask 64512   ;;  %s2982_s12 = sld [smem:[#allocation41_spill]] }
 0x122   :  { %v1849_v16 = vpack.c.bf16 %v336_v14, %v335_v13  ;;  %v338_v17 = vld [vmem:[#allocation11 + $0x18] sm:$0xff]  ;;  %v423_v20 = vld [vmem:[#allocation5] sm:$0xff]  ;;  %v424_v28 = vld [vmem:[#allocation5 + $0x8] sm:$0xff]  ;;  %vm775_vm5 = vcmask 130048   ;;  %vm868_vm6 = vcmask 785408   ;;  %s2983_s23 = sld [smem:[#allocation42_spill]] }
 0x123   :  { %1844 = vmatpush3.bf16.msra.mxu0 %v1843_v5  ;;  %v242_v18 = vld [vmem:[#allocation2] sm:$0xff]  ;;  %v1852_v21 = vpack.c.bf16 %v338_v17, %v337_v15  ;;  %v516_v30 = vld [vmem:[%s2935_s9 + $0x8] sm:$0xff]  ;;  %v517_v32 = vld [vmem:[%s2935_s9 + $0x10] sm:$0xff]  ;;  %s2359_s11 = smov [#allocation23]  }
 0x124   :  { %1845 = vmatprep.subr.bf16.mxu0 %v2356_v0  ;;  %1850 = vmatpush3.bf16.msra.mxu1 %v1849_v16  ;;  %v515_v29 = vld [vmem:[%s2935_s9] sm:$0xff]  ;;  %v518_v33 = vld [vmem:[%s2935_s9 + $0x18] sm:$0xff]  ;;  %v520_v36 = vld [vmem:[%s2935_s9 + $0x28] sm:$0xff] }
 0x125   :  { %1851 = vmatprep.subr.bf16.mxu1 %v2356_v0  ;;  %v1870_v31 = vpack.c.bf16 %v516_v30, %v515_v29  ;;  %v1874_v34 = vpack.c.bf16 %v518_v33, %v517_v32  ;;  %v519_v35 = vld [vmem:[%s2935_s9 + $0x20] sm:$0xff]  ;;  %s2981_s9 = sld [smem:[#allocation34_spill]]  ;;  %v688_v54 = vld [vmem:[%s2941_s15 + $0x8] sm:$0xff]  ;;  %v689_v56 = vld [vmem:[%s2941_s15 + $0x10] sm:$0xff] }
 0x126   :  { %v425_v7 = vld [vmem:[%s2980_s8] sm:$0xff]  ;;  %v426_v8 = vld [vmem:[%s2980_s8 + $0x8] sm:$0xff]  ;;  %v427_v11 = vld [vmem:[%s2980_s8 + $0x10] sm:$0xff]  ;;  %v1878_v37 = vpack.c.bf16 %v520_v36, %v519_v35 }
 0x127   :  { %v1854_v10 = vpack.c.bf16 %v426_v8, %v425_v7  ;;  %v428_v12 = vld [vmem:[%s2980_s8 + $0x18] sm:$0xff]  ;;  %1847 = vmatpush3.bf16.msra.mxu0 %v1846_v9  ;;  %v429_v22 = vld [vmem:[%s2980_s8 + $0x20] sm:$0xff]  ;;  %v430_v23 = vld [vmem:[%s2980_s8 + $0x28] sm:$0xff] }
 0x128   :  { %v1858_v19 = vpack.c.bf16 %v428_v12, %v427_v11  ;;  %v1862_v24 = vpack.c.bf16 %v430_v23, %v429_v22  ;;  %1853 = vmatpush3.bf16.msra.mxu1 %v1852_v21  ;;  %v431_v25 = vld [vmem:[%s2980_s8 + $0x30] sm:$0xff]  ;;  %v432_v26 = vld [vmem:[%s2980_s8 + $0x38] sm:$0xff]  ;;  %v1507_v38 = vld [vmem:[#allocation10] ss:$0 sm:$0xff] }
 0x129   :  { %1855 = vmatprep.subr.bf16.mxu0 %v1854_v10  ;;  %v1866_v27 = vpack.c.bf16 %v432_v26, %v431_v25  ;;  %1871 = vmatprep.subr.bf16.mxu1 %v1870_v31  ;;  %v687_v53 = vld [vmem:[%s2941_s15] sm:$0xff]  ;;  %v690_v57 = vld [vmem:[%s2941_s15 + $0x18] sm:$0xff]  ;;  %v850_v6 = vld [vmem:[%s2936_s10 + $0x8] sm:$0xff] }
 0x12a   :  { %1647 = vmatmul.mubr.msk.f32.vlgmr.msra.gmra.mrb[0].mxu0 %vm254_vm1, %v242_v18  ;;  %v1882_v55 = vpack.c.bf16 %v688_v54, %v687_v53  ;;  %v1886_v58 = vpack.c.bf16 %v690_v57, %v689_v56  ;;  %v849_v5 = vld [vmem:[%s2936_s10] sm:$0xff]  ;;  %v774_v8 = vld [vmem:[#allocation7] sm:$0xff]  ;;  %v854_v14 = vld [vmem:[%s2936_s10 + $0x28] sm:$0xff] }
 0x12b   :  { %1857 = vmatpush3.bf16.msra.mxu0 %v1854_v10  ;;  %1676 = vmatprep.mubr.msk.f32.mxu0 %vm433_vm2, %v423_v20  ;;  %v603_v49 = vld [vmem:[%s2981_s9] sm:$0xff]  ;;  %v604_v52 = vld [vmem:[%s2981_s9 + $0x8] sm:$0xff]  ;;  %v1894_v9 = vpack.c.bf16 %v850_v6, %v849_v5  ;;  %v851_v10 = vld [vmem:[%s2936_s10 + $0x10] sm:$0xff] }
 0x12c   :  { %1859 = vmatprep.subr.bf16.mxu0 %v1858_v19  ;;  %1658 = vmatmul.mubr.msk.f32.vlgmr.msra.gmra.mrb[0].mxu1 %vm254_vm1, %v242_v18  ;;  %v852_v11 = vld [vmem:[%s2936_s10 + $0x18] sm:$0xff]  ;;  %v853_v13 = vld [vmem:[%s2936_s10 + $0x20] sm:$0xff]  ;;  %v855_v16 = vld [vmem:[%s2936_s10 + $0x30] sm:$0xff] }
 0x12d   :  { %1873 = vmatpush3.bf16.msra.mxu1 %v1870_v31  ;;  %v1897_v12 = vpack.c.bf16 %v852_v11, %v851_v10  ;;  %v1900_v15 = vpack.c.bf16 %v854_v14, %v853_v13  ;;  %v856_v17 = vld [vmem:[%s2936_s10 + $0x38] sm:$0xff]  ;;  %v858_v20 = vld [vmem:[%s2936_s10 + $0x48] sm:$0xff]  ;;  %v859_v22 = vld [vmem:[%s2936_s10 + $0x50] sm:$0xff] }
 0x12e   :  { %1875 = vmatprep.subr.bf16.mxu1 %v1874_v34  ;;  %v1903_v18 = vpack.c.bf16 %v856_v17, %v855_v16  ;;  %v860_v23 = vld [vmem:[%s2936_s10 + $0x58] sm:$0xff]  ;;  %v1020_v25 = vld [vmem:[%s2939_s13] sm:$0xff]  ;;  %v1021_v26 = vld [vmem:[%s2939_s13 + $0x8] sm:$0xff] }
 0x12f   :  { %1861 = vmatpush3.bf16.msra.mxu0 %v1858_v19  ;;  %v857_v19 = vld [vmem:[%s2936_s10 + $0x40] sm:$0xff]  ;;  %v1023_v29 = vld [vmem:[%s2939_s13 + $0x18] sm:$0xff]  ;;  %v1025_v32 = vld [vmem:[%s2939_s13 + $0x28] sm:$0xff] }
 0x130   :  { %1863 = vmatprep.subr.bf16.mxu0 %v1862_v24  ;;  %v1906_v21 = vpack.c.bf16 %v858_v20, %v857_v19  ;;  %v1024_v31 = vld [vmem:[%s2939_s13 + $0x20] sm:$0xff]  ;;  %v1027_v35 = vld [vmem:[%s2939_s13 + $0x38] sm:$0xff]  ;;  %v1120_v57 = vld [vmem:[%s2942_s16 + $0x8] sm:$0xff] }
 0x131   :  { %1877 = vmatpush3.bf16.msra.mxu1 %v1874_v34  ;;  %v1924_v33 = vpack.c.bf16 %v1025_v32, %v1024_v31  ;;  %v1026_v34 = vld [vmem:[%s2939_s13 + $0x30] sm:$0xff]  ;;  %v1522_v53 = vld [vmem:[#allocation14] ss:$0 sm:$0xff]  ;;  %v1130_v10 = vld [vmem:[%s2942_s16 + $0x58] sm:$0xff] }
 0x132   :  { %1879 = vmatprep.subr.bf16.mxu1 %v1878_v37  ;;  %v1927_v36 = vpack.c.bf16 %v1027_v35, %v1026_v34  ;;  %v1127_v6 = vld [vmem:[%s2942_s16 + $0x40] sm:$0xff] }
 0x133   :  { %1865 = vmatpush3.bf16.msra.mxu0 %v1862_v24  ;;  %v1909_v24 = vpack.c.bf16 %v860_v23, %v859_v22  ;;  %v1219_v22 = vld [vmem:[#allocation19 + $0x8] sm:$0xff] }
 0x134   :  { %1867 = vmatprep.subr.bf16.mxu0 %v1866_v27 }
 0x135   :  { %1881 = vmatpush3.bf16.msra.mxu1 %v1878_v37  ;;  %v1028_v37 = vld [vmem:[%s2939_s13 + $0x40] sm:$0xff] }
 0x137   :  { %1869 = vmatpush3.bf16.msra.mxu0 %v1866_v27  ;;  %v1022_v27 = vld [vmem:[%s2939_s13 + $0x10] sm:$0xff] }
 0x138   :  { %1883 = vmatprep.subr.bf16.mxu0 %v1882_v55  ;;  %v1921_v30 = vpack.c.bf16 %v1023_v29, %v1022_v27  ;;  %v1528_v27 = vld [vmem:[%s2943_s17] ss:$0 sm:$0xff] }
 0x13a   :  { %1677 = vmatmul.mubr.msk.f32.vlgmr.msra.gmra.mrb[2].mxu0 %vm433_vm2, %v424_v28  ;;  %v1918_v28 = vpack.c.bf16 %v1021_v26, %v1020_v25  ;;  %v1221_v25 = vld [vmem:[#allocation19 + $0x18] sm:$0xff] }
 0x13b   :  { %1885 = vmatpush3.bf16.msra.mxu0 %v1882_v55 }
 0x13c   :  { %1887 = vmatprep.subr.bf16.mxu0 %v1886_v58 }
 0x13f   :  { %1889 = vmatpush3.bf16.msra.mxu0 %v1886_v58 }
 0x140   :  { %1917 = vmatprep.subr.bf16.mxu0 %v2356_v0 }
 0x1fd   :  { %v324_v39 = vpop.f32.mrb[0].mxu0 }
 0x1fe   :  { %v325_v40 = vadd.f32 %v1507_v38, %v324_v39  ;;  %v1648_v41 = vpop.f32.mrb[1].mxu0  ;;  %v1029_v38 = vld [vmem:[%s2939_s13 + $0x48] sm:$0xff] }
 0x1ff   :  { %v2716_v43 = vpop.f32.mrb[0].mxu1  ;;  %v1930_v39 = vpack.c.bf16 %v1029_v38, %v1028_v37  ;;  %v943_v41 = vld [vmem:[#allocation16 + $0x8] sm:$0xff] }
 0x200   :  { %v1509_v42 = vmul.f32 -1.442695, %v325_v40  ;;  %v1659_v44 = vpop.f32.mrb[1].mxu1  ;;  %v1311_v37 = vld [vmem:[#allocation20 + $0x8] sm:$0xff] }
 0x201   :  { %v944_v44 = vld [vmem:[#allocation16 + $0x10] sm:$0xff] }
 0x202   :  { %1993 = vpow2.f32 %v1509_v42 }
 0x20c   :  { %v1994_v45 = vpop.eup %1993 }
 0x20d   :  { %v331_v46 = vadd.f32 1.0, %v1994_v45  ;;  %v1678_v47 = vpop.f32.mrb[2].mxu0  ;;  %v945_v45 = vld [vmem:[#allocation16 + $0x18] sm:$0xff] }
 0x20e   :  { %v506_v48 = vpop.f32.mrb[3].mxu0 }
 0x20f   :  { %1995 = vrcp.f32 %v331_v46  ;;  %1691 = vmatprep.mubr.msk.f32.mxu1 %vm521_vm3, %v506_v48  ;;  %v1915_v48 = vpack.c.bf16 %v945_v45, %v944_v44 }
 0x210   :  { %1692 = vmatmul.mubr.msk.f32.vlgmr.msra.gmra.mrb[2].mxu1 %vm521_vm3, %v1678_v47 }
 0x211   :  { %1696 = vmatprep.mubr.msk.f32.mxu1 %vm605_vm4, %v603_v49  ;;  %v1030_v49 = vld [vmem:[%s2939_s13 + $0x50] sm:$0xff] }
 0x219   :  { %v1996_v50 = vpop.eup %1995 }
 0x21a   :  { %v2721_v51 = vmul.f32 %v1996_v50, %v325_v40  ;;  %v942_v40 = vld [vmem:[#allocation16] sm:$0xff]  ;;  %v1031_v50 = vld [vmem:[%s2939_s13 + $0x58] sm:$0xff]  ;;  %s1492_s13 = sshll.u32 %s2359_s11, 4  ;;  %s1493_s13 = int_to_ptr.vmem [resolvable:$true] %s1492_s13 }
 0x21b   :  { %v1912_v42 = vpack.c.bf16 %v943_v41, %v942_v40  ;;  %v1313_v40 = vld [vmem:[#allocation20 + $0x18] sm:$0xff]  ;;  %s2303_s27 = scalar_lea.vmem %s1493_s13, 128  ;;  %p2308_p7 = scmp.lt.s32.totalorder %s1493_s13, %s1493_s13 }
 0x21c   :  { %1694 = vmatprep.subr.mxu1 %v2721_v51  ;;  %p2304_p6 = scmp.ne.s32.totalorder %s1493_s13, %s2303_s27  ;;  %p2309_p8 = scmp.lt.s32.totalorder %s2303_s27, %s2303_s27 }
 0x21d   :  { %1695 = vmatpush3.msra.mxu1 %v2721_v51 }
 0x21e   :  { %1697 = vmatmul.mubr.msk.f32.vlgmr.msra.gmra.mrb[4].mxu1 %vm605_vm4, %v604_v52  ;;  %1890 = vmatprep.subr.bf16.mxu1 %v2356_v0  ;;  %v1933_v52 = vpack.c.bf16 %v1031_v50, %v1030_v49  ;;  %p2310_p9 = por %p2309_p8, %p2308_p7 }
 0x21f   :  { %1714 = vmatprep.mubr.msk.f32.mxu1 %vm2357_vm0, %v2358_v1 }
 0x220   :  { %p2311_p10 = pnand %p2310_p9, %p2304_p6 }
 0x2e3   :  { %v1693_v59 = vpop.f32.mrb[2].mxu1 }
 0x2e4   :  { %v594_v60 = vpop.f32.mrb[3].mxu1 }
 0x2f1   :  { %v1698_v61 = vpop.f32.mrb[4].mxu1 }
 0x2f2   :  { %v678_v62 = vpop.f32.mrb[5].mxu1 }
 0x2f3   :  { %1707 = vmatprep.mubr.msk.f32.mxu0 %vm254_vm1, %v678_v62  ;;  %v1123_v62 = vld [vmem:[%s2942_s16 + $0x20] sm:$0xff] }
 0x2f4   :  { %1708 = vmatmul.mubr.msk.f32.vlgmr.msra.gmra.mrb[4].mxu0 %vm254_vm1, %v1698_v61 }
 0x2f5   :  { %1779 = vmatprep.mubr.msk.f32.mxu0 %vm2357_vm0, %v2358_v1  ;;  %1919 = vmatpush3.bf16.msra.mxu0 %v1918_v28 }
 0x2f6   :  { %1920 = vmatprep.subr.bf16.mxu0 %v2356_v0 }
 0x2f9   :  { %1922 = vmatpush3.bf16.msra.mxu0 %v1921_v30 }
 0x2fa   :  { %1923 = vmatprep.subr.bf16.mxu0 %v2356_v0 }
 0x2fd   :  { %1925 = vmatpush3.bf16.msra.mxu0 %v1924_v33 }
 0x2fe   :  { %1926 = vmatprep.subr.bf16.mxu0 %v2356_v0 }
 0x301   :  { %1928 = vmatpush3.bf16.msra.mxu0 %v1927_v36  ;;  %v1310_v36 = vld [vmem:[#allocation20] sm:$0xff] }
 0x302   :  { %1929 = vmatprep.subr.bf16.mxu0 %v2356_v0  ;;  %v1960_v38 = vpack.c.bf16 %v1311_v37, %v1310_v36 }
 0x305   :  { %1931 = vmatpush3.bf16.msra.mxu0 %v1930_v39  ;;  %v1312_v39 = vld [vmem:[#allocation20 + $0x10] sm:$0xff] }
 0x306   :  { %1932 = vmatprep.subr.bf16.mxu0 %v2356_v0  ;;  %v1963_v41 = vpack.c.bf16 %v1313_v40, %v1312_v39 }
 0x309   :  { %1934 = vmatpush3.bf16.msra.mxu0 %v1933_v52 }
 0x30a   :  { %1935 = vmatprep.subr.bf16.mxu0 %v2356_v0 }
 0x3c7   :  { %v1709_v63 = vpop.f32.mrb[4].mxu0 }
 0x3c8   :  { %v773_v2 = vmul.f32 %v1709_v63, %v1693_v59  ;;  %v763_v3 = vpop.f32.mrb[5].mxu0  ;;  %v1121_v59 = vld [vmem:[%s2942_s16 + $0x10] sm:$0xff]  ;;  %v1124_v63 = vld [vmem:[%s2942_s16 + $0x28] sm:$0xff] }
 0x3c9   :  { %v772_v4 = vmul.f32 %v763_v3, %v594_v60  ;;  %v1122_v60 = vld [vmem:[%s2942_s16 + $0x18] sm:$0xff]  ;;  %v1125_v3 = vld [vmem:[%s2942_s16 + $0x30] sm:$0xff] }
 0x3ca   :  { %v1939_v61 = vpack.c.bf16 %v1122_v60, %v1121_v59  ;;  %v1401_v59 = vld [vmem:[#allocation22] sm:$0xff]  ;;  %v1402_v60 = vld [vmem:[#allocation22 + $0x8] sm:$0xff] }
 0x3cb   :  { %v1891_v7 = vpack.c.bf16 %v773_v2, %v772_v4  ;;  %v1942_v2 = vpack.c.bf16 %v1124_v63, %v1123_v62  ;;  %v1126_v4 = vld [vmem:[%s2942_s16 + $0x38] sm:$0xff]  ;;  %v1404_v63 = vld [vmem:[#allocation22 + $0x18] sm:$0xff] }
 0x3cc   :  { %v1945_v5 = vpack.c.bf16 %v1126_v4, %v1125_v3  ;;  %v1403_v62 = vld [vmem:[#allocation22 + $0x10] sm:$0xff]  ;;  %v1534_v3 = vld [vmem:[%s2982_s12] ss:$0 sm:$0xff] }
 0x3cd   :  { %1892 = vmatpush3.bf16.msra.mxu1 %v1891_v7  ;;  %v1128_v7 = vld [vmem:[%s2942_s16 + $0x48] sm:$0xff] }
 0x3ce   :  { %1893 = vmatprep.subr.bf16.mxu1 %v2356_v0 }
 0x3d0   :  { %1715 = vmatmul.mubr.msk.f32.vlgmr.msra.gmra.mrb[6].mxu1 %vm775_vm5, %v774_v8  ;;  %v1948_v8 = vpack.c.bf16 %v1128_v7, %v1127_v6 }
 0x3d1   :  { %1895 = vmatpush3.bf16.msra.mxu1 %v1894_v9  ;;  %1741 = vmatprep.mubr.msk.f32.mxu1 %vm2357_vm0, %v2358_v1  ;;  %v1129_v9 = vld [vmem:[%s2942_s16 + $0x50] sm:$0xff] }
 0x3d2   :  { %1896 = vmatprep.subr.bf16.mxu1 %v2356_v0  ;;  %v1951_v11 = vpack.c.bf16 %v1130_v10, %v1129_v9 }
 0x3d5   :  { %1898 = vmatpush3.bf16.msra.mxu1 %v1897_v12  ;;  %v1525_v12 = vld [vmem:[#allocation17] ss:$0 sm:$0xff] }
 0x3d6   :  { %1899 = vmatprep.subr.bf16.mxu1 %v2356_v0 }
 0x3d9   :  { %1901 = vmatpush3.bf16.msra.mxu1 %v1900_v15 }
 0x3da   :  { %1902 = vmatprep.subr.bf16.mxu1 %v2356_v0 }
 0x3dd   :  { %1904 = vmatpush3.bf16.msra.mxu1 %v1903_v18 }
 0x3de   :  { %1905 = vmatprep.subr.bf16.mxu1 %v2356_v0 }
 0x3e1   :  { %1907 = vmatpush3.bf16.msra.mxu1 %v1906_v21  ;;  %v1218_v21 = vld [vmem:[#allocation19] sm:$0xff] }
 0x3e2   :  { %1908 = vmatprep.subr.bf16.mxu1 %v2356_v0  ;;  %v1954_v23 = vpack.c.bf16 %v1219_v22, %v1218_v21 }
 0x3e5   :  { %1910 = vmatpush3.bf16.msra.mxu1 %v1909_v24  ;;  %v1220_v24 = vld [vmem:[#allocation19 + $0x10] sm:$0xff] }
 0x3e6   :  { %1911 = vmatprep.subr.bf16.mxu1 %v2356_v0  ;;  %v1957_v26 = vpack.c.bf16 %v1221_v25, %v1220_v24 }
 0x4a3   :  { %v845_v46 = vpop.f32.mrb[6].mxu1 }
 0x4a4   :  { %1742 = vmatmul.mubr.msk.f32.vlgmr.msra.gmra.mrb[8].mxu1 %vm868_vm6, %v845_v46  ;;  %v1716_v47 = vpop.f32.mrb[7].mxu1  ;;  %v1531_v46 = vld [vmem:[%s2945_s19] ss:$0 sm:$0xff] }
 0x4a5   :  { %1913 = vmatpush3.bf16.msra.mxu1 %v1912_v42  ;;  %1752 = vmatprep.mubr.msk.f32.mxu1 %vm2357_vm0, %v2358_v1  ;;  %v1510_v42 = vld [vmem:[#allocation13] ss:$0 sm:$0xff] }
 0x4a6   :  { %1914 = vmatprep.subr.bf16.mxu1 %v2356_v0  ;;  %v413_v44 = vadd.f32 %v1510_v42, %v2716_v43 }
 0x4a8   :  { %v1512_v45 = vmul.f32 -1.442695, %v413_v44 }
 0x4a9   :  { %1916 = vmatpush3.bf16.msra.mxu1 %v1915_v48 }
 0x4aa   :  { %1953 = vmatprep.subr.bf16.mxu1 %v2356_v0 }
 0x4ac   :  { %1753 = vmatmul.mubr.msk.f32.vlgmr.msra.gmra.mrb[8].mxu1 %vm254_vm1, %v2721_v51  ;;  %v1119_v51 = vld [vmem:[%s2942_s16] sm:$0xff] }
 0x4ad   :  { %1817 = vmatprep.mubr.msk.f32.mxu1 %vm2357_vm0, %v2358_v1  ;;  %v1936_v58 = vpack.c.bf16 %v1120_v57, %v1119_v51  ;;  %1955 = vmatpush3.bf16.msra.mxu1 %v1954_v23 }
 0x4ae   :  { %1956 = vmatprep.subr.bf16.mxu1 %v2356_v0 }
 0x4b1   :  { %1958 = vmatpush3.bf16.msra.mxu1 %v1957_v26 }
 0x4b2   :  { %1959 = vmatprep.subr.bf16.mxu1 %v2356_v0 }
 0x57f   :  { %v1015_v54 = vpop.f32.mrb[8].mxu1 }
 0x580   :  { %v1971_v55 = vadd.f32 %v1522_v53, %v1015_v54  ;;  %v1754_v56 = vpop.f32.mrb[9].mxu1 }
 0x582   :  { %1780 = vmatmul.mubr.msk.f32.vlgmr.msra.gmra.mrb[6].mxu0 %vm868_vm6, %v1971_v55 }
 0x583   :  { %1806 = vmatprep.mubr.msk.f32.mxu0 %vm2357_vm0, %v2358_v1  ;;  %1937 = vmatpush3.bf16.msra.mxu0 %v1936_v58 }
 0x584   :  { %1938 = vmatprep.subr.bf16.mxu0 %v2356_v0 }
 0x587   :  { %1940 = vmatpush3.bf16.msra.mxu0 %v1939_v61  ;;  %v1966_v61 = vpack.c.bf16 %v1402_v60, %v1401_v59 }
 0x588   :  { %1941 = vmatprep.subr.bf16.mxu0 %v2356_v0 }
 0x58b   :  { %1943 = vmatpush3.bf16.msra.mxu0 %v1942_v2  ;;  %v1969_v2 = vpack.c.bf16 %v1404_v63, %v1403_v62 }
 0x58c   :  { %1944 = vmatprep.subr.bf16.mxu0 %v2356_v0 }
 0x58f   :  { %1946 = vmatpush3.bf16.msra.mxu0 %v1945_v5 }
 0x590   :  { %1947 = vmatprep.subr.bf16.mxu0 %v2356_v0 }
 0x593   :  { %1949 = vmatpush3.bf16.msra.mxu0 %v1948_v8 }
 0x594   :  { %1950 = vmatprep.subr.bf16.mxu0 %v2356_v0 }
 0x597   :  { %1952 = vmatpush3.bf16.msra.mxu0 %v1951_v11 }
 0x655   :  { %v1108_v13 = vpop.f32.mrb[6].mxu0 }
 0x656   :  { %v1109_v14 = vadd.f32 %v1525_v12, %v1108_v13  ;;  %v1781_v15 = vpop.f32.mrb[7].mxu0 }
 0x658   :  { %v1527_v16 = vmul.f32 -1.442695, %v1109_v14 }
 0x65a   :  { %1997 = vpow2.f32 %v1527_v16 }
 0x664   :  { %v1998_v17 = vpop.eup %1997 }
 0x665   :  { %v1115_v18 = vadd.f32 1.0, %v1998_v17 }
 0x667   :  { %1999 = vrcp.f32 %v1115_v18 }
 0x671   :  { %v2000_v19 = vpop.eup %1999 }
 0x672   :  { %v1118_v20 = vmul.f32 %v2000_v19, %v1109_v14 }
 0x674   :  { %1807 = vmatmul.mubr.msk.f32.vlgmr.msra.gmra.mrb[8].mxu0 %vm868_vm6, %v1118_v20 }
 0x747   :  { %v1207_v28 = vpop.f32.mrb[8].mxu0 }
 0x748   :  { %v1208_v29 = vadd.f32 %v1528_v27, %v1207_v28  ;;  %v1808_v30 = vpop.f32.mrb[9].mxu0 }
 0x74a   :  { %v1530_v31 = vmul.f32 -1.442695, %v1208_v29 }
 0x74c   :  { %2001 = vpow2.f32 %v1530_v31 }
 0x756   :  { %v2002_v32 = vpop.eup %2001 }
 0x757   :  { %v1214_v33 = vadd.f32 1.0, %v2002_v32 }
 0x759   :  { %2003 = vrcp.f32 %v1214_v33 }
 0x75a   :  { %2005 = vpow2.f32 %v1512_v45 }
 0x763   :  { %v2004_v34 = vpop.eup %2003 }
 0x764   :  { %v1217_v35 = vmul.f32 %v2004_v34, %v1208_v29  ;;  %v2006_v52 = vpop.eup %2005 }
 0x765   :  { %v419_v53 = vadd.f32 1.0, %v2006_v52 }
 0x766   :  { %1818 = vmatmul.mubr.msk.f32.vlgmr.msra.gmra.mrb[10].mxu1 %vm254_vm1, %v1217_v35 }
 0x767   :  { %1828 = vmatprep.mubr.msk.f32.mxu1 %vm2357_vm0, %v2358_v1  ;;  %1961 = vmatpush3.bf16.msra.mxu1 %v1960_v38 }
 0x768   :  { %1962 = vmatprep.subr.bf16.mxu1 %v2356_v0 }
 0x76b   :  { %1964 = vmatpush3.bf16.msra.mxu1 %v1963_v41 }
 0x76c   :  { %1965 = vmatprep.subr.bf16.mxu1 %v2356_v0 }
 0x839   :  { %v1298_v47 = vpop.f32.mrb[10].mxu1 }
 0x83a   :  { %v1299_v48 = vadd.f32 %v1531_v46, %v1298_v47  ;;  %v1819_v49 = vpop.f32.mrb[11].mxu1 }
 0x83c   :  { %v1533_v50 = vmul.f32 -1.442695, %v1299_v48 }
 0x83e   :  { %2007 = vpow2.f32 %v1533_v50 }
 0x83f   :  { %2009 = vrcp.f32 %v419_v53 }
 0x848   :  { %v2008_v54 = vpop.eup %2007 }
 0x849   :  { %v1305_v55 = vadd.f32 1.0, %v2008_v54  ;;  %v2010_v56 = vpop.eup %2009 }
 0x84a   :  { %v422_v43 = vmul.f32 %v2010_v56, %v413_v44 }
 0x84b   :  { %2011 = vrcp.f32 %v1305_v55 }
 0x855   :  { %v2012_v51 = vpop.eup %2011 }
 0x856   :  { %v1308_v57 = vmul.f32 %v2012_v51, %v1299_v48 }
 0x858   :  { %v1309_v58 = vadd.f32 %v1308_v57, %v422_v43 }
 0x85a   :  { %1829 = vmatmul.mubr.msk.f32.vlgmr.msra.gmra.mrb[12].mxu1 %vm254_vm1, %v1309_v58 }
 0x85b   :  { %1839 = vmatprep.mubr.msk.f32.mxu1 %vm2357_vm0, %v2358_v1  ;;  %1967 = vmatpush3.bf16.msra.mxu1 %v1966_v61 }
 0x85c   :  { %1968 = vmatprep.subr.bf16.mxu1 %v2356_v0  ;;  %v1537_v0 = vld [vmem:[%s2983_s23] ss:$0 sm:$0xff] }
 0x85f   :  { %1970 = vmatpush3.bf16.msra.mxu1 %v1969_v2 }
 0x92d   :  { %v1390_v4 = vpop.f32.mrb[12].mxu1 }
 0x92e   :  { %v1391_v5 = vadd.f32 %v1534_v3, %v1390_v4  ;;  %v1830_v6 = vpop.f32.mrb[13].mxu1 }
 0x930   :  { %v1536_v7 = vmul.f32 -1.442695, %v1391_v5 }
 0x932   :  { %2013 = vpow2.f32 %v1536_v7 }
 0x93c   :  { %v2014_v1 = vpop.eup %2013 }
 0x93d   :  { %v1397_v8 = vadd.f32 1.0, %v2014_v1 }
 0x93f   :  { %2015 = vrcp.f32 %v1397_v8 }
 0x949   :  { %v2016_v9 = vpop.eup %2015 }
 0x94a   :  { %v1400_v10 = vmul.f32 %v2016_v9, %v1391_v5 }
 0x94c   :  { %1840 = vmatmul.mubr.msk.f32.vlgmr.msra.gmra.mrb[14].mxu1 %vm254_vm1, %v1400_v10 }
 0xa1f   :  { %v1481_v11 = vpop.f32.mrb[14].mxu1 }
 0xa20   :  { %v1482_v12 = vadd.f32 %v1537_v0, %v1481_v11  ;;  %v1841_v13 = vpop.f32.mrb[15].mxu1 }
 0xa22   :  { %1485 = vst [vmem:[#allocation23] sm:$0xff] %v1482_v12 }
 0xa23   :  { %2314 = shalt.err (!%p2311_p10)
}
 0xa24   :  { %s2984_s0 = sld [smem:[#allocation43_spill]] }
 0xa2a   :  { %s2315_s7 = scalar_lea.hbm %s2984_s0, 128 }
 0xa2b   :  { %p2316_p11 = scmp.ne.s32.totalorder %s2984_s0, %s2315_s7  ;;  %p2319_p12 = scmp.lt.u32.totalorder %s2315_s7, %s2984_s0 }
 0xa2d   :  { %p2321_p13 = pnand %p2319_p12, %p2316_p11 }
 0xa2f   :  { %2324 = shalt.err (!%p2321_p13)
}
 0xa30   :  { %1495 = dma.vmem_to_hbm [thread:$0]  %s1493_s13, 128, %s2984_s0, [#allocation4]  }
 0xa31   :  { %2339 = dma.done.wait [#allocation4], 128  }
 0xa32   :  { %2340 = vsyncadd [#allocation4], 4294967168 }
 0xa33   :  { %1499 = vsyncpa [#allocation3], 1 }
 0xa34   :  { %1500 = vsyncpa [#allocation6], 1 }
 0xa35   :  { %1501 = vsyncpa [#allocation9], 1 }
 0xa36   :  { %1502 = vsyncpa [#allocation12], 1 }
 0xa37   :  { %1503 = vsyncpa [#allocation15], 1 }
 0xa38   :  { %1504 = vsyncpa [#allocation18], 1 }
 0xa39   :  { %1505 = vsyncpa [#allocation21], 1 }
 0xa3a   :  { %1506 = vsyncpa [#allocation4], 1 }

</bundles_post_ra>
